<compile_context>
chip_gen: v6e
topology: v6e:2x2x1
jax: 0.10.0
libtpu: 0.0.40
codegen_flags: <defaults>
</compile_context>

<pallas_src>
import functools

import jax
import jax.numpy as jnp
from jax import lax
from jax.experimental import pallas as pl
from jax.experimental.pallas import tpu as pltpu


# --------------------------------------------------------------------------
# Kernel: single Gram block (2 * D^2 * 4 bytes fits comfortably in VMEM)
# --------------------------------------------------------------------------
def _vicreg_single_kernel(x_ref, y_ref, out_ref, mom_ref, gx_ref, gy_ref, *,
                          eps, N, has_row_tail, bf16_gram):
    nb = pl.program_id(1)
    n_nb = pl.num_programs(1)

    xg = x_ref[0]                       # (TN, D), native dtype
    yg = y_ref[0]
    tn = xg.shape[0]

    if has_row_tail:
        rows = lax.broadcasted_iota(jnp.int32, xg.shape, 0)
        valid = rows < (N - nb * tn)
        xg = jnp.where(valid, xg, 0)
        yg = jnp.where(valid, yg, 0)

    x = xg.astype(jnp.float32)
    y = yg.astype(jnp.float32)
    diff = x - y

    sx = jnp.sum(x, axis=0, keepdims=True)
    sy = jnp.sum(y, axis=0, keepdims=True)
    sx2 = jnp.sum(x * x, axis=0, keepdims=True)
    sy2 = jnp.sum(y * y, axis=0, keepdims=True)
    sse = jnp.sum(diff * diff, axis=0, keepdims=True)

    if bf16_gram and xg.dtype == jnp.float32:
        xg = xg.astype(jnp.bfloat16)
        yg = yg.astype(jnp.bfloat16)

    # lhs contracting dim 0 == pl.dot(trans_a=True): MXU-native transposed LHS.
    dims_nn = (((0,), (0,)), ((), ()))
    gx_cur = lax.dot_general(xg, xg, dims_nn, preferred_element_type=jnp.float32)
    gy_cur = lax.dot_general(yg, yg, dims_nn, preferred_element_type=jnp.float32)

    @pl.when(nb == 0)
    def _assign_first():
        mom_ref[0:1, :] = sx
        mom_ref[1:2, :] = sy
        mom_ref[2:3, :] = sx2
        mom_ref[3:4, :] = sy2
        mom_ref[4:5, :] = sse
        gx_ref[...] = gx_cur
        gy_ref[...] = gy_cur

    @pl.when(nb != 0)
    def _accumulate():
        mom_ref[0:1, :] += sx
        mom_ref[1:2, :] += sy
        mom_ref[2:3, :] += sx2
        mom_ref[3:4, :] += sy2
        mom_ref[4:5, :] += sse
        gx_ref[...] += gx_cur
        gy_ref[...] += gy_cur

    @pl.when(nb == n_nb - 1)
    def _finalize():
        nf = float(N)
        inv_n = 1.0 / nf
        inv_nm1 = 1.0 / float(N - 1)

        mx = mom_ref[0:1, :] * inv_n
        my = mom_ref[1:2, :] * inv_n
        var_x = (mom_ref[2:3, :] - nf * mx * mx) * inv_nm1
        var_y = (mom_ref[3:4, :] - nf * my * my) * inv_nm1
        std_x = jnp.sqrt(var_x + eps)
        std_y = jnp.sqrt(var_y + eps)
        hinge = (jnp.sum(jnp.maximum(1.0 - std_x, 0.0)) +
                 jnp.sum(jnp.maximum(1.0 - std_y, 0.0)))

        gx = gx_ref[...]
        gy = gy_ref[...]
        dims_vm = (((1,), (0,)), ((), ()))      # (1,D) @ (D,D) -> (1,D)
        mgx = lax.dot_general(mx, gx, dims_vm, preferred_element_type=jnp.float32)
        mgy = lax.dot_general(my, gy, dims_vm, preferred_element_type=jnp.float32)
        mgm_x = jnp.sum(mgx * mx)
        mgm_y = jnp.sum(mgy * my)
        s2x = jnp.sum(mx * mx)
        s2y = jnp.sum(my * my)
        inv2 = inv_nm1 * inv_nm1
        cov2_x = (jnp.sum(gx * gx) - 2.0 * nf * mgm_x + (nf * s2x) * (nf * s2x)) * inv2
        cov2_y = (jnp.sum(gy * gy) - 2.0 * nf * mgm_y + (nf * s2y) * (nf * s2y)) * inv2
        cov_off = (cov2_x - jnp.sum(var_x * var_x) +
                   cov2_y - jnp.sum(var_y * var_y))
        sse_tot = jnp.sum(mom_ref[4:5, :])

        lane = lax.broadcasted_iota(jnp.int32, (8, 128), 1)
        out_ref[0] = (jnp.where(lane == 0, sse_tot, 0.0) +
                      jnp.where(lane == 1, hinge, 0.0) +
                      jnp.where(lane == 2, cov_off, 0.0))


# --------------------------------------------------------------------------
# Kernel: (Di, Dj)-tiled Gram blocks for large D (full G never materialized)
# --------------------------------------------------------------------------
def _vicreg_tiled_kernel(xi_ref, yi_ref, xj_ref, yj_ref, out_ref,
                         mom_ref, gx_ref, gy_ref, *,
                         eps, N, D, has_row_tail, has_col_tail, bf16_gram):
    di = pl.program_id(1)
    dj = pl.program_id(2)
    nb = pl.program_id(3)
    n_d = pl.num_programs(1)
    n_nb = pl.num_programs(3)
    last = nb == n_nb - 1

    tn = xi_ref.shape[1]
    td = xi_ref.shape[2]
    lane = lax.broadcasted_iota(jnp.int32, (8, 128), 1)

    @pl.when((di == 0) & (dj == 0) & (nb == 0))
    def _init_out():
        out_ref[...] = jnp.zeros_like(out_ref)

    def load(ref, dblk):
        raw = ref[0]                            # (TN, TD), native dtype
        m = None
        if has_row_tail:
            rows = lax.broadcasted_iota(jnp.int32, (tn, td), 0)
            m = rows < (N - nb * tn)
        if has_col_tail:
            cols = lax.broadcasted_iota(jnp.int32, (tn, td), 1)
            cm = (dblk * td + cols) < D
            m = cm if m is None else jnp.logical_and(m, cm)
        if m is not None:
            raw = jnp.where(m, raw, 0)
        return raw

    xi = load(xi_ref, di)
    yi = load(yi_ref, di)
    xj = load(xj_ref, dj)
    yj = load(yj_ref, dj)

    # ---- streaming Gram block G[di, dj] = sum_n x[n, di-blk]^T x[n, dj-blk] ----
    xi_mm, xj_mm, yi_mm, yj_mm = xi, xj, yi, yj
    if bf16_gram and xi.dtype == jnp.float32:
        xi_mm = xi.astype(jnp.bfloat16)
        xj_mm = xj.astype(jnp.bfloat16)
        yi_mm = yi.astype(jnp.bfloat16)
        yj_mm = yj.astype(jnp.bfloat16)
    dims_nn = (((0,), (0,)), ((), ()))          # MXU-native transposed LHS
    gx_cur = lax.dot_general(xi_mm, xj_mm, dims_nn, preferred_element_type=jnp.float32)
    gy_cur = lax.dot_general(yi_mm, yj_mm, dims_nn, preferred_element_type=jnp.float32)

    @pl.when(nb == 0)
    def _g_assign():
        gx_ref[...] = gx_cur
        gy_ref[...] = gy_cur

    @pl.when(nb != 0)
    def _g_accum():
        gx_ref[...] += gx_cur
        gy_ref[...] += gy_cur

    # ---- streaming moments / SSE (only on the di == 0 sweep) ----
    ci = pl.multiple_of(di * td, td)
    cj = pl.multiple_of(dj * td, td)

    def moment_rows():
        xf = xj.astype(jnp.float32)
        yf = yj.astype(jnp.float32)
        d = xf - yf
        return (jnp.sum(xf, axis=0, keepdims=True),
                jnp.sum(yf, axis=0, keepdims=True),
                jnp.sum(xf * xf, axis=0, keepdims=True),
                jnp.sum(yf * yf, axis=0, keepdims=True),
                jnp.sum(d * d, axis=0, keepdims=True))

    @pl.when((di == 0) & (nb == 0))
    def _m_assign():
        r = moment_rows()
        for k in range(5):
            mom_ref[k:k + 1, pl.ds(cj, td)] = r[k]

    @pl.when((di == 0) & (nb != 0))
    def _m_accum():
        r = moment_rows()
        for k in range(5):
            mom_ref[k:k + 1, pl.ds(cj, td)] += r[k]

    # ---- fold this Gram block into scalar partials at its last N-chunk ----
    nf = float(N)
    inv_n = 1.0 / nf
    inv_nm1 = 1.0 / float(N - 1)

    @pl.when(last)
    def _fin_block():
        mxi = mom_ref[0:1, pl.ds(ci, td)] * inv_n
        myi = mom_ref[1:2, pl.ds(ci, td)] * inv_n
        mxj = mom_ref[0:1, pl.ds(cj, td)] * inv_n
        myj = mom_ref[1:2, pl.ds(cj, td)] * inv_n
        gx = gx_ref[...]
        gy = gy_ref[...]
        dims_vm = (((1,), (0,)), ((), ()))
        mgx = lax.dot_general(mxi, gx, dims_vm, preferred_element_type=jnp.float32)
        mgy = lax.dot_general(myi, gy, dims_vm, preferred_element_type=jnp.float32)
        mgm_x = jnp.sum(mgx * mxj)
        mgm_y = jnp.sum(mgy * myj)
        s2xi = jnp.sum(mxi * mxi)
        s2xj = jnp.sum(mxj * mxj)
        s2yi = jnp.sum(myi * myi)
        s2yj = jnp.sum(myj * myj)
        inv2 = inv_nm1 * inv_nm1
        cov2 = ((jnp.sum(gx * gx) - 2.0 * nf * mgm_x + nf * nf * s2xi * s2xj) +
                (jnp.sum(gy * gy) - 2.0 * nf * mgm_y + nf * nf * s2yi * s2yj)) * inv2
        out_ref[0] += jnp.where(lane == 2, cov2, 0.0)

    @pl.when(last & (di == dj))
    def _fin_diag():
        mxi = mom_ref[0:1, pl.ds(ci, td)] * inv_n
        myi = mom_ref[1:2, pl.ds(ci, td)] * inv_n
        var_x = (mom_ref[2:3, pl.ds(ci, td)] - nf * mxi * mxi) * inv_nm1
        var_y = (mom_ref[3:4, pl.ds(ci, td)] - nf * myi * myi) * inv_nm1
        std_x = jnp.sqrt(var_x + eps)
        std_y = jnp.sqrt(var_y + eps)
        h = jnp.maximum(1.0 - std_x, 0.0) + jnp.maximum(1.0 - std_y, 0.0)
        if has_col_tail:
            feat = ci + lax.broadcasted_iota(jnp.int32, (1, td), 1)
            h = jnp.where(feat < D, h, 0.0)
        hinge = jnp.sum(h)
        diag_adj = -(jnp.sum(var_x * var_x) + jnp.sum(var_y * var_y))
        out_ref[0] += (jnp.where(lane == 1, hinge, 0.0) +
                       jnp.where(lane == 2, diag_adj, 0.0))

    @pl.when(last & (di == n_d - 1) & (dj == n_d - 1))
    def _fin_global():
        sse_tot = jnp.sum(mom_ref[4:5, :])
        out_ref[0] += jnp.where(lane == 0, sse_tot, 0.0)


# --------------------------------------------------------------------------
# Wrapper: generation-aware sizing + cross-batch reduction
# --------------------------------------------------------------------------
def _vmem_capacity_bytes():
    try:
        info = pltpu.get_tpu_info()
        for attr in ("vmem_capacity_bytes", "vmem_size_bytes", "vmem_bytes"):
            v = getattr(info, attr, None)
            if v:
                return int(v)
    except Exception:
        pass
    return 64 * 1024 * 1024          # conservative (v7x per-TensorCore VMEM)


def _pick_vmem_limit(capacity):
    return max(32 << 20, min(capacity - (16 << 20), 112 << 20))


def vicreg_loss(x, y, *, sim_coef=25.0, var_coef=25.0, cov_coef=1.0, eps=1e-5,
                block_n=None, block_d=None, bf16_gram=False):
    """JAX/Pallas equivalent of VICRegLoss.forward. Returns (total, log_dict)."""
    if x.shape != y.shape:
        raise ValueError("x and y must have the same shape")
    B = x.shape[0]
    D = x.shape[-1]
    x = x.reshape(B, -1, D)
    y = y.reshape(B, -1, D)
    N = x.shape[1]
    if N < 2:
        raise ValueError("VICReg variance/covariance require N >= 2")

    itemsize = jnp.dtype(x.dtype).itemsize
    sublane = max(8, 32 // itemsize)          # 8 f32 / 16 bf16 / 32 int8
    vmem_limit = _pick_vmem_limit(_vmem_capacity_bytes())

    # ---- Gram layout: one (D, D) block vs (TD, TD) tiles over a (Di, Dj) grid
    full_gram_bytes = 2 * D * D * 4
    if block_d is not None:
        TD = int(block_d)
        if TD % 128 != 0:
            raise ValueError("block_d must be a multiple of 128")
        tiled = D > TD
    else:
        TD = 256
        tiled = full_gram_bytes > min(vmem_limit // 3, 16 << 20)

    if tiled:
        n_d = pl.cdiv(D, TD)
        Dp = n_d * TD
        gram_bytes = 2 * TD * TD * 4
        views = 2                              # i-view and j-view per tensor
        row_width = TD
    else:
        n_d = 1
        Dp = D
        gram_bytes = full_gram_bytes
        views = 1
        row_width = D
    mom_bytes = 8 * Dp * 4

    # ---- N-chunk size from the remaining (double-buffered) input budget ----
    if block_n is not None:
        TN = min(int(block_n), N)
        if TN != N and (TN <= 0 or TN % 8 != 0):
            raise ValueError("block_n must be a positive multiple of 8 (or >= N)")
    else:
        budget = max(vmem_limit - gram_bytes - mom_bytes - (4 << 20), 2 << 20)
        per_row = 2 * views * 2 * row_width * itemsize     # x&y, views, 2 buffers
        TN = min(budget // per_row, 2048, N)
        TN = (TN // sublane) * sublane
        if TN <= 0:
            TN = N                              # tiny N: block dim == full dim
    n_nb = pl.cdiv(N, TN)
    has_row_tail = (n_nb * TN != N)
    has_col_tail = tiled and (Dp != D)

    cp = pltpu.CompilerParams(
        dimension_semantics=("parallel",) + ("arbitrary",) * (3 if tiled else 1),
        vmem_limit_bytes=int(vmem_limit),
    )
    out_shape = jax.ShapeDtypeStruct((B, 8, 128), jnp.float32)

    if not tiled:
        kernel = functools.partial(
            _vicreg_single_kernel, eps=float(eps), N=N,
            has_row_tail=has_row_tail, bf16_gram=bf16_gram)
        partials = pl.pallas_call(
            kernel,
            out_shape=out_shape,
            grid=(B, n_nb),
            in_specs=[
                pl.BlockSpec((1, TN, D), lambda b, nb: (b, nb, 0)),
                pl.BlockSpec((1, TN, D), lambda b, nb: (b, nb, 0)),
            ],
            out_specs=pl.BlockSpec((1, 8, 128), lambda b, nb: (b, 0, 0)),
            scratch_shapes=[
                pltpu.VMEM((8, D), jnp.float32),      # packed moment accumulators
                pltpu.VMEM((D, D), jnp.float32),      # X^T X
                pltpu.VMEM((D, D), jnp.float32),      # Y^T Y
            ],
            compiler_params=cp,
        )(x, y)
    else:
        kernel = functools.partial(
            _vicreg_tiled_kernel, eps=float(eps), N=N, D=D,
            has_row_tail=has_row_tail, has_col_tail=has_col_tail,
            bf16_gram=bf16_gram)
        spec_i = pl.BlockSpec((1, TN, TD), lambda b, di, dj, nb: (b, nb, di))
        spec_j = pl.BlockSpec((1, TN, TD), lambda b, di, dj, nb: (b, nb, dj))
        partials = pl.pallas_call(
            kernel,
            out_shape=out_shape,
            grid=(B, n_d, n_d, n_nb),
            in_specs=[spec_i, spec_i, spec_j, spec_j],
            out_specs=pl.BlockSpec((1, 8, 128), lambda b, di, dj, nb: (b, 0, 0)),
            scratch_shapes=[
                pltpu.VMEM((8, Dp), jnp.float32),     # packed moment accumulators
                pltpu.VMEM((TD, TD), jnp.float32),    # current X^T X block
                pltpu.VMEM((TD, TD), jnp.float32),    # current Y^T Y block
            ],
            compiler_params=cp,
        )(x, y, x, y)

    # Tiny cross-batch reduction + coefficient scaling in plain JAX.
    p = partials[:, 0, :]                       # (B, 128)
    sse = jnp.sum(p[:, 0])
    hinge = jnp.sum(p[:, 1])
    cov_sq = jnp.sum(p[:, 2])

    sim_loss = sse / float(B * N * D)
    var_loss = hinge / float(B * D)
    cov_loss = cov_sq / float(D) / float(B)
    total = sim_coef * sim_loss + var_coef * var_loss + cov_coef * cov_loss
    return total, {"sim_loss": sim_loss, "var_loss": var_loss, "cov_loss": cov_loss}


# --------------------------------------------------------------------------
# Pure-JAX reference matching the PyTorch module
# --------------------------------------------------------------------------
def _vicreg_ref(x, y, sim_coef=25.0, var_coef=25.0, cov_coef=1.0, eps=1e-5):
    B = x.shape[0]
    D = x.shape[-1]
    x = x.reshape(B, -1, D).astype(jnp.float32)
    y = y.reshape(B, -1, D).astype(jnp.float32)
    N = x.shape[1]
    sim_loss = jnp.mean((x - y) ** 2)
    std_x = jnp.sqrt(jnp.var(x, axis=1, ddof=1) + eps)
    std_y = jnp.sqrt(jnp.var(y, axis=1, ddof=1) + eps)
    var_loss = (jnp.mean(jax.nn.relu(1 - std_x)) +
                jnp.mean(jax.nn.relu(1 - std_y)))
    xc = x - x.mean(axis=1, keepdims=True)
    yc = y - y.mean(axis=1, keepdims=True)
    hi = jax.lax.Precision.HIGHEST
    cov_x = jnp.einsum("bnd,bne->bde", xc, xc, precision=hi) / (N - 1)
    cov_y = jnp.einsum("bnd,bne->bde", yc, yc, precision=hi) / (N - 1)
    off = 1.0 - jnp.eye(D)
    cov_loss = (jnp.sum((cov_x * off) ** 2) / D +
                jnp.sum((cov_y * off) ** 2) / D) / B
    total = sim_coef * sim_loss + var_coef * var_loss + cov_coef * cov_loss
    return total, sim_loss, var_loss, cov_loss


def _check(tag, got_total, got_logs, x, y):
    ref_total, ref_sim, ref_var, ref_cov = _vicreg_ref(x, y)
    ok = (jnp.allclose(got_total, ref_total, rtol=5e-4, atol=5e-4) and
          jnp.allclose(got_logs["sim_loss"], ref_sim, rtol=5e-4, atol=1e-5) and
          jnp.allclose(got_logs["var_loss"], ref_var, rtol=5e-4, atol=2e-4) and
          jnp.allclose(got_logs["cov_loss"], ref_cov, rtol=5e-4, atol=5e-4))
    assert bool(ok), (tag, got_total, ref_total, got_logs,
                      (ref_sim, ref_var, ref_cov))


if __name__ == "__main__":
    key = jax.random.PRNGKey(0)
    k1, k2, k3, k4 = jax.random.split(key, 4)

    # 1) Main example: (B, H, W, D) embeddings -> reshaped to (B, N, D) = (2, 64, 32).
    #    Exercises the single-Gram-block fast path.
    B, H, W, D = 2, 8, 8, 32
    x = jax.random.normal(k1, (B, H, W, D), dtype=jnp.float32)
    y = x + 0.1 * jax.random.normal(k2, (B, H, W, D), dtype=jnp.float32)
    total, logs = vicreg_loss(x, y)
    total = jax.block_until_ready(total)
    _check("single-block", total, logs, x, y)

    # 2) Same inputs with a forced small N-chunk: exercises multi-chunk
    #    accumulation + masked row tail on the single-block path.
    total_c, logs_c = vicreg_loss(x, y, block_n=24)
    jax.block_until_ready(total_c)
    _check("single-block-chunked", total_c, logs_c, x, y)

    # 3) Forced Gram tiling at small shapes: (B, N, D) = (2, 40, 192) with
    #    128x128 Gram blocks -> 2x2 D-blocks (off-diagonal blocks + feature
    #    tail masking) and a masked N tail (TN=32).
    x2 = jax.random.normal(k3, (2, 40, 192), dtype=jnp.float32)
    y2 = x2 + 0.1 * jax.random.normal(k4, (2, 40, 192), dtype=jnp.float32)
    total_t, logs_t = vicreg_loss(x2, y2, block_d=128, block_n=32)
    jax.block_until_ready(total_t)
    _check("tiled", total_t, logs_t, x2, y2)

    print("KERNEL_OK")
</pallas_src>

<mosaic_0001>
module attributes {stable_mosaic.version = 11 : i64} {
  func.func @_vicreg_single_kernel(%arg0: i32, %arg1: i32, %arg2: memref<1x64x32xf32, #tpu.memory_space<vmem>>, %arg3: memref<1x64x32xf32, #tpu.memory_space<vmem>>, %arg4: memref<1x8x128xf32, #tpu.memory_space<vmem>>, %arg5: memref<8x32xf32, #tpu.memory_space<vmem>>, %arg6: memref<32x32xf32, #tpu.memory_space<vmem>>, %arg7: memref<32x32xf32, #tpu.memory_space<vmem>>) attributes {dimension_semantics = [#tpu.dimension_semantics<parallel>, #tpu.dimension_semantics<arbitrary>], iteration_bounds = array<i64: 2, 1>, scalar_prefetch = 0 : i64, scratch_operands = 3 : i64, tpu.core_type = #tpu.core_type<tc>, window_params = [{transform_indices = @transform_0, window_bounds = array<i64: 1, 64, 32>}, {transform_indices = @transform_1, window_bounds = array<i64: 1, 64, 32>}, {transform_indices = @transform_2, window_bounds = array<i64: 1, 8, 128>}]} {
    %c0 = arith.constant 0 : index
    %c0_0 = arith.constant 0 : index
    %c0_1 = arith.constant 0 : index
    %0 = vector.load %arg2[%c0, %c0_0, %c0_1] : memref<1x64x32xf32, #tpu.memory_space<vmem>>, vector<1x64x32xf32>
    %1 = vector.shape_cast %0 : vector<1x64x32xf32> to vector<64x32xf32>
    %c0_2 = arith.constant 0 : index
    %c0_3 = arith.constant 0 : index
    %c0_4 = arith.constant 0 : index
    %2 = vector.load %arg3[%c0_2, %c0_3, %c0_4] : memref<1x64x32xf32, #tpu.memory_space<vmem>>, vector<1x64x32xf32>
    %3 = vector.shape_cast %2 : vector<1x64x32xf32> to vector<64x32xf32>
    %4 = arith.subf %1, %3 : vector<64x32xf32>
    %cst = arith.constant dense<0.000000e+00> : vector<32xf32>
    %5 = vector.multi_reduction <add>, %1, %cst [0] : vector<64x32xf32> to vector<32xf32>
    %6 = vector.shape_cast %5 : vector<32xf32> to vector<1x32xf32>
    %cst_5 = arith.constant dense<0.000000e+00> : vector<32xf32>
    %7 = vector.multi_reduction <add>, %3, %cst_5 [0] : vector<64x32xf32> to vector<32xf32>
    %8 = vector.shape_cast %7 : vector<32xf32> to vector<1x32xf32>
    %9 = arith.mulf %1, %1 : vector<64x32xf32>
    %cst_6 = arith.constant dense<0.000000e+00> : vector<32xf32>
    %10 = vector.multi_reduction <add>, %9, %cst_6 [0] : vector<64x32xf32> to vector<32xf32>
    %11 = vector.shape_cast %10 : vector<32xf32> to vector<1x32xf32>
    %12 = arith.mulf %3, %3 : vector<64x32xf32>
    %cst_7 = arith.constant dense<0.000000e+00> : vector<32xf32>
    %13 = vector.multi_reduction <add>, %12, %cst_7 [0] : vector<64x32xf32> to vector<32xf32>
    %14 = vector.shape_cast %13 : vector<32xf32> to vector<1x32xf32>
    %15 = arith.mulf %4, %4 : vector<64x32xf32>
    %cst_8 = arith.constant dense<0.000000e+00> : vector<32xf32>
    %16 = vector.multi_reduction <add>, %15, %cst_8 [0] : vector<64x32xf32> to vector<32xf32>
    %17 = vector.shape_cast %16 : vector<32xf32> to vector<1x32xf32>
    %cst_9 = arith.constant dense<0.000000e+00> : vector<32x32xf32>
    %18 = tpu.matmul %1, %1, %cst_9 {dimension_numbers = #tpu.dot_dimension_numbers<[0], [0], [1], [1], [0, 1, 1, 1], [], []>} : vector<64x32xf32>, vector<64x32xf32>, vector<32x32xf32> -> vector<32x32xf32>
    %cst_10 = arith.constant dense<0.000000e+00> : vector<32x32xf32>
    %19 = tpu.matmul %3, %3, %cst_10 {dimension_numbers = #tpu.dot_dimension_numbers<[0], [0], [1], [1], [0, 1, 1, 1], [], []>} : vector<64x32xf32>, vector<64x32xf32>, vector<32x32xf32> -> vector<32x32xf32>
    %c0_i32 = arith.constant 0 : i32
    %20 = arith.cmpi eq, %arg1, %c0_i32 : i32
    %21 = arith.extui %20 : i1 to i32
    %c0_i32_11 = arith.constant 0 : i32
    %22 = arith.cmpi ne, %21, %c0_i32_11 : i32
    scf.if %22 {
      %c0_16 = arith.constant 0 : index
      %c0_17 = arith.constant 0 : index
      %29 = vector.load %arg5[%c0_16, %c0_17] : memref<8x32xf32, #tpu.memory_space<vmem>>, vector<1x32xf32>
      tpu.vector_store %arg5[%c0_16, %c0_17], %6 {strides = array<i32>} : memref<8x32xf32, #tpu.memory_space<vmem>>, vector<1x32xf32>,
      %c1 = arith.constant 1 : index
      %c0_18 = arith.constant 0 : index
      %30 = vector.load %arg5[%c1, %c0_18] : memref<8x32xf32, #tpu.memory_space<vmem>>, vector<1x32xf32>
      tpu.vector_store %arg5[%c1, %c0_18], %8 {strides = array<i32>} : memref<8x32xf32, #tpu.memory_space<vmem>>, vector<1x32xf32>,
      %c2 = arith.constant 2 : index
      %c0_19 = arith.constant 0 : index
      %31 = vector.load %arg5[%c2, %c0_19] : memref<8x32xf32, #tpu.memory_space<vmem>>, vector<1x32xf32>
      tpu.vector_store %arg5[%c2, %c0_19], %11 {strides = array<i32>} : memref<8x32xf32, #tpu.memory_space<vmem>>, vector<1x32xf32>,
      %c3 = arith.constant 3 : index
      %c0_20 = arith.constant 0 : index
      %32 = vector.load %arg5[%c3, %c0_20] : memref<8x32xf32, #tpu.memory_space<vmem>>, vector<1x32xf32>
      tpu.vector_store %arg5[%c3, %c0_20], %14 {strides = array<i32>} : memref<8x32xf32, #tpu.memory_space<vmem>>, vector<1x32xf32>,
      %c4 = arith.constant 4 : index
      %c0_21 = arith.constant 0 : index
      %33 = vector.load %arg5[%c4, %c0_21] : memref<8x32xf32, #tpu.memory_space<vmem>>, vector<1x32xf32>
      tpu.vector_store %arg5[%c4, %c0_21], %17 {strides = array<i32>} : memref<8x32xf32, #tpu.memory_space<vmem>>, vector<1x32xf32>,
      %c0_22 = arith.constant 0 : index
      %c0_23 = arith.constant 0 : index
      %34 = vector.load %arg6[%c0_22, %c0_23] : memref<32x32xf32, #tpu.memory_space<vmem>>, vector<32x32xf32>
      tpu.vector_store %arg6[%c0_22, %c0_23], %18 {strides = array<i32>} : memref<32x32xf32, #tpu.memory_space<vmem>>, vector<32x32xf32>,
      %c0_24 = arith.constant 0 : index
      %c0_25 = arith.constant 0 : index
      %35 = vector.load %arg7[%c0_24, %c0_25] : memref<32x32xf32, #tpu.memory_space<vmem>>, vector<32x32xf32>
      tpu.vector_store %arg7[%c0_24, %c0_25], %19 {strides = array<i32>} : memref<32x32xf32, #tpu.memory_space<vmem>>, vector<32x32xf32>,
    } else {
    }
    %c0_i32_12 = arith.constant 0 : i32
    %23 = arith.cmpi ne, %arg1, %c0_i32_12 : i32
    %24 = arith.extui %23 : i1 to i32
    %c0_i32_13 = arith.constant 0 : i32
    %25 = arith.cmpi ne, %24, %c0_i32_13 : i32
    scf.if %25 {
      %c0_16 = arith.constant 0 : index
      %c0_17 = arith.constant 0 : index
      %29 = vector.load %arg5[%c0_16, %c0_17] : memref<8x32xf32, #tpu.memory_space<vmem>>, vector<1x32xf32>
      %30 = arith.addf %29, %6 : vector<1x32xf32>
      %c0_18 = arith.constant 0 : index
      %c0_19 = arith.constant 0 : index
      %31 = vector.load %arg5[%c0_18, %c0_19] : memref<8x32xf32, #tpu.memory_space<vmem>>, vector<1x32xf32>
      tpu.vector_store %arg5[%c0_18, %c0_19], %30 {strides = array<i32>} : memref<8x32xf32, #tpu.memory_space<vmem>>, vector<1x32xf32>,
      %c1 = arith.constant 1 : index
      %c0_20 = arith.constant 0 : index
      %32 = vector.load %arg5[%c1, %c0_20] : memref<8x32xf32, #tpu.memory_space<vmem>>, vector<1x32xf32>
      %33 = arith.addf %32, %8 : vector<1x32xf32>
      %c1_21 = arith.constant 1 : index
      %c0_22 = arith.constant 0 : index
      %34 = vector.load %arg5[%c1_21, %c0_22] : memref<8x32xf32, #tpu.memory_space<vmem>>, vector<1x32xf32>
      tpu.vector_store %arg5[%c1_21, %c0_22], %33 {strides = array<i32>} : memref<8x32xf32, #tpu.memory_space<vmem>>, vector<1x32xf32>,
      %c2 = arith.constant 2 : index
      %c0_23 = arith.constant 0 : index
      %35 = vector.load %arg5[%c2, %c0_23] : memref<8x32xf32, #tpu.memory_space<vmem>>, vector<1x32xf32>
      %36 = arith.addf %35, %11 : vector<1x32xf32>
      %c2_24 = arith.constant 2 : index
      %c0_25 = arith.constant 0 : index
      %37 = vector.load %arg5[%c2_24, %c0_25] : memref<8x32xf32, #tpu.memory_space<vmem>>, vector<1x32xf32>
      tpu.vector_store %arg5[%c2_24, %c0_25], %36 {strides = array<i32>} : memref<8x32xf32, #tpu.memory_space<vmem>>, vector<1x32xf32>,
      %c3 = arith.constant 3 : index
      %c0_26 = arith.constant 0 : index
      %38 = vector.load %arg5[%c3, %c0_26] : memref<8x32xf32, #tpu.memory_space<vmem>>, vector<1x32xf32>
      %39 = arith.addf %38, %14 : vector<1x32xf32>
      %c3_27 = arith.constant 3 : index
      %c0_28 = arith.constant 0 : index
      %40 = vector.load %arg5[%c3_27, %c0_28] : memref<8x32xf32, #tpu.memory_space<vmem>>, vector<1x32xf32>
      tpu.vector_store %arg5[%c3_27, %c0_28], %39 {strides = array<i32>} : memref<8x32xf32, #tpu.memory_space<vmem>>, vector<1x32xf32>,
      %c4 = arith.constant 4 : index
      %c0_29 = arith.constant 0 : index
      %41 = vector.load %arg5[%c4, %c0_29] : memref<8x32xf32, #tpu.memory_space<vmem>>, vector<1x32xf32>
      %42 = arith.addf %41, %17 : vector<1x32xf32>
      %c4_30 = arith.constant 4 : index
      %c0_31 = arith.constant 0 : index
      %43 = vector.load %arg5[%c4_30, %c0_31] : memref<8x32xf32, #tpu.memory_space<vmem>>, vector<1x32xf32>
      tpu.vector_store %arg5[%c4_30, %c0_31], %42 {strides = array<i32>} : memref<8x32xf32, #tpu.memory_space<vmem>>, vector<1x32xf32>,
      %c0_32 = arith.constant 0 : index
      %c0_33 = arith.constant 0 : index
      %44 = vector.load %arg6[%c0_32, %c0_33] : memref<32x32xf32, #tpu.memory_space<vmem>>, vector<32x32xf32>
      %45 = arith.addf %44, %18 : vector<32x32xf32>
      %c0_34 = arith.constant 0 : index
      %c0_35 = arith.constant 0 : index
      %46 = vector.load %arg6[%c0_34, %c0_35] : memref<32x32xf32, #tpu.memory_space<vmem>>, vector<32x32xf32>
      tpu.vector_store %arg6[%c0_34, %c0_35], %45 {strides = array<i32>} : memref<32x32xf32, #tpu.memory_space<vmem>>, vector<32x32xf32>,
      %c0_36 = arith.constant 0 : index
      %c0_37 = arith.constant 0 : index
      %47 = vector.load %arg7[%c0_36, %c0_37] : memref<32x32xf32, #tpu.memory_space<vmem>>, vector<32x32xf32>
      %48 = arith.addf %47, %19 : vector<32x32xf32>
      %c0_38 = arith.constant 0 : index
      %c0_39 = arith.constant 0 : index
      %49 = vector.load %arg7[%c0_38, %c0_39] : memref<32x32xf32, #tpu.memory_space<vmem>>, vector<32x32xf32>
      tpu.vector_store %arg7[%c0_38, %c0_39], %48 {strides = array<i32>} : memref<32x32xf32, #tpu.memory_space<vmem>>, vector<32x32xf32>,
    } else {
    }
    %c0_i32_14 = arith.constant 0 : i32
    %26 = arith.cmpi eq, %arg1, %c0_i32_14 : i32
    %27 = arith.extui %26 : i1 to i32
    %c0_i32_15 = arith.constant 0 : i32
    %28 = arith.cmpi ne, %27, %c0_i32_15 : i32
    scf.if %28 {
      %c0_16 = arith.constant 0 : index
      %c0_17 = arith.constant 0 : index
      %29 = vector.load %arg5[%c0_16, %c0_17] : memref<8x32xf32, #tpu.memory_space<vmem>>, vector<1x32xf32>
      %cst_18 = arith.constant 1.562500e-02 : f32
      %30 = vector.broadcast %cst_18 : f32 to vector<1x32xf32>
      %31 = arith.mulf %29, %30 : vector<1x32xf32>
      %c1 = arith.constant 1 : index
      %c0_19 = arith.constant 0 : index
      %32 = vector.load %arg5[%c1, %c0_19] : memref<8x32xf32, #tpu.memory_space<vmem>>, vector<1x32xf32>
      %cst_20 = arith.constant 1.562500e-02 : f32
      %33 = vector.broadcast %cst_20 : f32 to vector<1x32xf32>
      %34 = arith.mulf %32, %33 : vector<1x32xf32>
      %c2 = arith.constant 2 : index
      %c0_21 = arith.constant 0 : index
      %35 = vector.load %arg5[%c2, %c0_21] : memref<8x32xf32, #tpu.memory_space<vmem>>, vector<1x32xf32>
      %cst_22 = arith.constant 6.400000e+01 : f32
      %36 = vector.broadcast %cst_22 : f32 to vector<1x32xf32>
      %37 = arith.mulf %36, %31 : vector<1x32xf32>
      %38 = arith.mulf %37, %31 : vector<1x32xf32>
      %39 = arith.subf %35, %38 : vector<1x32xf32>
      %cst_23 = arith.constant 0.0158730168 : f32
      %40 = vector.broadcast %cst_23 : f32 to vector<1x32xf32>
      %41 = arith.mulf %39, %40 : vector<1x32xf32>
      %c3 = arith.constant 3 : index
      %c0_24 = arith.constant 0 : index
      %42 = vector.load %arg5[%c3, %c0_24] : memref<8x32xf32, #tpu.memory_space<vmem>>, vector<1x32xf32>
      %cst_25 = arith.constant 6.400000e+01 : f32
      %43 = vector.broadcast %cst_25 : f32 to vector<1x32xf32>
      %44 = arith.mulf %43, %34 : vector<1x32xf32>
      %45 = arith.mulf %44, %34 : vector<1x32xf32>
      %46 = arith.subf %42, %45 : vector<1x32xf32>
      %cst_26 = arith.constant 0.0158730168 : f32
      %47 = vector.broadcast %cst_26 : f32 to vector<1x32xf32>
      %48 = arith.mulf %46, %47 : vector<1x32xf32>
      %cst_27 = arith.constant 9.99999974E-6 : f32
      %49 = vector.broadcast %cst_27 : f32 to vector<1x32xf32>
      %50 = arith.addf %41, %49 : vector<1x32xf32>
      %51 = math.sqrt %50 : vector<1x32xf32>
      %cst_28 = arith.constant 9.99999974E-6 : f32
      %52 = vector.broadcast %cst_28 : f32 to vector<1x32xf32>
      %53 = arith.addf %48, %52 : vector<1x32xf32>
      %54 = math.sqrt %53 : vector<1x32xf32>
      %cst_29 = arith.constant 1.000000e+00 : f32
      %55 = vector.broadcast %cst_29 : f32 to vector<1x32xf32>
      %56 = arith.subf %55, %51 : vector<1x32xf32>
      %cst_30 = arith.constant 0.000000e+00 : f32
      %57 = vector.broadcast %cst_30 : f32 to vector<1x32xf32>
      %58 = arith.maximumf %56, %57 : vector<1x32xf32>
      %59 = vector.shape_cast %58 : vector<1x32xf32> to vector<1x1x32xf32>
      %cst_31 = arith.constant dense<0.000000e+00> : vector<1xf32>
      %60 = vector.multi_reduction <add>, %59, %cst_31 [1, 2] : vector<1x1x32xf32> to vector<1xf32>
      %61 = vector.shape_cast %60 : vector<1xf32> to vector<1x1x1xf32>
      %62 = vector.extract %61[0, 0, 0] : f32 from vector<1x1x1xf32>
      %cst_32 = arith.constant 1.000000e+00 : f32
      %63 = vector.broadcast %cst_32 : f32 to vector<1x32xf32>
      %64 = arith.subf %63, %54 : vector<1x32xf32>
      %cst_33 = arith.constant 0.000000e+00 : f32
      %65 = vector.broadcast %cst_33 : f32 to vector<1x32xf32>
      %66 = arith.maximumf %64, %65 : vector<1x32xf32>
      %67 = vector.shape_cast %66 : vector<1x32xf32> to vector<1x1x32xf32>
      %cst_34 = arith.constant dense<0.000000e+00> : vector<1xf32>
      %68 = vector.multi_reduction <add>, %67, %cst_34 [1, 2] : vector<1x1x32xf32> to vector<1xf32>
      %69 = vector.shape_cast %68 : vector<1xf32> to vector<1x1x1xf32>
      %70 = vector.extract %69[0, 0, 0] : f32 from vector<1x1x1xf32>
      %71 = arith.addf %62, %70 : f32
      %c0_35 = arith.constant 0 : index
      %c0_36 = arith.constant 0 : index
      %72 = vector.load %arg6[%c0_35, %c0_36] : memref<32x32xf32, #tpu.memory_space<vmem>>, vector<32x32xf32>
      %c0_37 = arith.constant 0 : index
      %c0_38 = arith.constant 0 : index
      %73 = vector.load %arg7[%c0_37, %c0_38] : memref<32x32xf32, #tpu.memory_space<vmem>>, vector<32x32xf32>
      %cst_39 = arith.constant dense<0.000000e+00> : vector<1x32xf32>
      %74 = tpu.matmul %31, %72, %cst_39 {dimension_numbers = #tpu.dot_dimension_numbers<[1], [0], [0], [1], [0, 0, 1, 1], [], []>} : vector<1x32xf32>, vector<32x32xf32>, vector<1x32xf32> -> vector<1x32xf32>
      %cst_40 = arith.constant dense<0.000000e+00> : vector<1x32xf32>
      %75 = tpu.matmul %34, %73, %cst_40 {dimension_numbers = #tpu.dot_dimension_numbers<[1], [0], [0], [1], [0, 0, 1, 1], [], []>} : vector<1x32xf32>, vector<32x32xf32>, vector<1x32xf32> -> vector<1x32xf32>
      %76 = arith.mulf %74, %31 : vector<1x32xf32>
      %77 = vector.shape_cast %76 : vector<1x32xf32> to vector<1x1x32xf32>
      %cst_41 = arith.constant dense<0.000000e+00> : vector<1xf32>
      %78 = vector.multi_reduction <add>, %77, %cst_41 [1, 2] : vector<1x1x32xf32> to vector<1xf32>
      %79 = vector.shape_cast %78 : vector<1xf32> to vector<1x1x1xf32>
      %80 = vector.extract %79[0, 0, 0] : f32 from vector<1x1x1xf32>
      %81 = arith.mulf %75, %34 : vector<1x32xf32>
      %82 = vector.shape_cast %81 : vector<1x32xf32> to vector<1x1x32xf32>
      %cst_42 = arith.constant dense<0.000000e+00> : vector<1xf32>
      %83 = vector.multi_reduction <add>, %82, %cst_42 [1, 2] : vector<1x1x32xf32> to vector<1xf32>
      %84 = vector.shape_cast %83 : vector<1xf32> to vector<1x1x1xf32>
      %85 = vector.extract %84[0, 0, 0] : f32 from vector<1x1x1xf32>
      %86 = arith.mulf %31, %31 : vector<1x32xf32>
      %87 = vector.shape_cast %86 : vector<1x32xf32> to vector<1x1x32xf32>
      %cst_43 = arith.constant dense<0.000000e+00> : vector<1xf32>
      %88 = vector.multi_reduction <add>, %87, %cst_43 [1, 2] : vector<1x1x32xf32> to vector<1xf32>
      %89 = vector.shape_cast %88 : vector<1xf32> to vector<1x1x1xf32>
      %90 = vector.extract %89[0, 0, 0] : f32 from vector<1x1x1xf32>
      %91 = arith.mulf %34, %34 : vector<1x32xf32>
      %92 = vector.shape_cast %91 : vector<1x32xf32> to vector<1x1x32xf32>
      %cst_44 = arith.constant dense<0.000000e+00> : vector<1xf32>
      %93 = vector.multi_reduction <add>, %92, %cst_44 [1, 2] : vector<1x1x32xf32> to vector<1xf32>
      %94 = vector.shape_cast %93 : vector<1xf32> to vector<1x1x1xf32>
      %95 = vector.extract %94[0, 0, 0] : f32 from vector<1x1x1xf32>
      %96 = arith.mulf %72, %72 : vector<32x32xf32>
      %97 = vector.shape_cast %96 : vector<32x32xf32> to vector<1x32x32xf32>
      %cst_45 = arith.constant dense<0.000000e+00> : vector<1xf32>
      %98 = vector.multi_reduction <add>, %97, %cst_45 [1, 2] : vector<1x32x32xf32> to vector<1xf32>
      %99 = vector.shape_cast %98 : vector<1xf32> to vector<1x1x1xf32>
      %100 = vector.extract %99[0, 0, 0] : f32 from vector<1x1x1xf32>
      %cst_46 = arith.constant 1.280000e+02 : f32
      %101 = arith.mulf %cst_46, %80 : f32
      %102 = arith.subf %100, %101 : f32
      %cst_47 = arith.constant 6.400000e+01 : f32
      %103 = arith.mulf %cst_47, %90 : f32
      %cst_48 = arith.constant 6.400000e+01 : f32
      %104 = arith.mulf %cst_48, %90 : f32
      %105 = arith.mulf %103, %104 : f32
      %106 = arith.addf %102, %105 : f32
      %cst_49 = arith.constant 2.51952646E-4 : f32
      %107 = arith.mulf %106, %cst_49 : f32
      %108 = arith.mulf %73, %73 : vector<32x32xf32>
      %109 = vector.shape_cast %108 : vector<32x32xf32> to vector<1x32x32xf32>
      %cst_50 = arith.constant dense<0.000000e+00> : vector<1xf32>
      %110 = vector.multi_reduction <add>, %109, %cst_50 [1, 2] : vector<1x32x32xf32> to vector<1xf32>
      %111 = vector.shape_cast %110 : vector<1xf32> to vector<1x1x1xf32>
      %112 = vector.extract %111[0, 0, 0] : f32 from vector<1x1x1xf32>
      %cst_51 = arith.constant 1.280000e+02 : f32
      %113 = arith.mulf %cst_51, %85 : f32
      %114 = arith.subf %112, %113 : f32
      %cst_52 = arith.constant 6.400000e+01 : f32
      %115 = arith.mulf %cst_52, %95 : f32
      %cst_53 = arith.constant 6.400000e+01 : f32
      %116 = arith.mulf %cst_53, %95 : f32
      %117 = arith.mulf %115, %116 : f32
      %118 = arith.addf %114, %117 : f32
      %cst_54 = arith.constant 2.51952646E-4 : f32
      %119 = arith.mulf %118, %cst_54 : f32
      %120 = arith.mulf %41, %41 : vector<1x32xf32>
      %121 = vector.shape_cast %120 : vector<1x32xf32> to vector<1x1x32xf32>
      %cst_55 = arith.constant dense<0.000000e+00> : vector<1xf32>
      %122 = vector.multi_reduction <add>, %121, %cst_55 [1, 2] : vector<1x1x32xf32> to vector<1xf32>
      %123 = vector.shape_cast %122 : vector<1xf32> to vector<1x1x1xf32>
      %124 = vector.extract %123[0, 0, 0] : f32 from vector<1x1x1xf32>
      %125 = arith.subf %107, %124 : f32
      %126 = arith.addf %125, %119 : f32
      %127 = arith.mulf %48, %48 : vector<1x32xf32>
      %128 = vector.shape_cast %127 : vector<1x32xf32> to vector<1x1x32xf32>
      %cst_56 = arith.constant dense<0.000000e+00> : vector<1xf32>
      %129 = vector.multi_reduction <add>, %128, %cst_56 [1, 2] : vector<1x1x32xf32> to vector<1xf32>
      %130 = vector.shape_cast %129 : vector<1xf32> to vector<1x1x1xf32>
      %131 = vector.extract %130[0, 0, 0] : f32 from vector<1x1x1xf32>
      %132 = arith.subf %126, %131 : f32
      %c4 = arith.constant 4 : index
      %c0_57 = arith.constant 0 : index
      %133 = vector.load %arg5[%c4, %c0_57] : memref<8x32xf32, #tpu.memory_space<vmem>>, vector<1x32xf32>
      %134 = vector.shape_cast %133 : vector<1x32xf32> to vector<1x1x32xf32>
      %cst_58 = arith.constant dense<0.000000e+00> : vector<1xf32>
      %135 = vector.multi_reduction <add>, %134, %cst_58 [1, 2] : vector<1x1x32xf32> to vector<1xf32>
      %136 = vector.shape_cast %135 : vector<1xf32> to vector<1x1x1xf32>
      %137 = vector.extract %136[0, 0, 0] : f32 from vector<1x1x1xf32>
      %138 = tpu.iota {dimensions = array<i32: 1>} : vector<8x128xi32>
      %c0_i32_59 = arith.constant 0 : i32
      %139 = vector.broadcast %c0_i32_59 : i32 to vector<8x128xi32>
      %140 = arith.cmpi eq, %138, %139 : vector<8x128xi32>
      %cst_60 = arith.constant 0.000000e+00 : f32
      %141 = vector.broadcast %137 : f32 to vector<8x128xf32>
      %142 = vector.broadcast %cst_60 : f32 to vector<8x128xf32>
      %143 = arith.select %140, %141, %142 : vector<8x128xi1>, vector<8x128xf32>
      %c1_i32 = arith.constant 1 : i32
      %144 = vector.broadcast %c1_i32 : i32 to vector<8x128xi32>
      %145 = arith.cmpi eq, %138, %144 : vector<8x128xi32>
      %cst_61 = arith.constant 0.000000e+00 : f32
      %146 = vector.broadcast %71 : f32 to vector<8x128xf32>
      %147 = vector.broadcast %cst_61 : f32 to vector<8x128xf32>
      %148 = arith.select %145, %146, %147 : vector<8x128xi1>, vector<8x128xf32>
      %149 = arith.addf %143, %148 : vector<8x128xf32>
      %c2_i32 = arith.constant 2 : i32
      %150 = vector.broadcast %c2_i32 : i32 to vector<8x128xi32>
      %151 = arith.cmpi eq, %138, %150 : vector<8x128xi32>
      %cst_62 = arith.constant 0.000000e+00 : f32
      %152 = vector.broadcast %132 : f32 to vector<8x128xf32>
      %153 = vector.broadcast %cst_62 : f32 to vector<8x128xf32>
      %154 = arith.select %151, %152, %153 : vector<8x128xi1>, vector<8x128xf32>
      %155 = arith.addf %149, %154 : vector<8x128xf32>
      %c0_63 = arith.constant 0 : index
      %c0_64 = arith.constant 0 : index
      %c0_65 = arith.constant 0 : index
      %156 = vector.load %arg4[%c0_63, %c0_64, %c0_65] : memref<1x8x128xf32, #tpu.memory_space<vmem>>, vector<1x8x128xf32>
      %157 = vector.shape_cast %156 : vector<1x8x128xf32> to vector<8x128xf32>
      %158 = vector.shape_cast %155 : vector<8x128xf32> to vector<1x8x128xf32>
      tpu.vector_store %arg4[%c0_63, %c0_64, %c0_65], %158 {strides = array<i32>} : memref<1x8x128xf32, #tpu.memory_space<vmem>>, vector<1x8x128xf32>,
    } else {
    }
    return
  }
  func.func @transform_0(%arg0: i32, %arg1: i32) -> (i32, i32, i32) {
    %c0_i32 = arith.constant 0 : i32
    %c0_i32_0 = arith.constant 0 : i32
    return %arg0, %arg1, %c0_i32 : i32, i32, i32
  }
  func.func @transform_1(%arg0: i32, %arg1: i32) -> (i32, i32, i32) {
    %c0_i32 = arith.constant 0 : i32
    %c0_i32_0 = arith.constant 0 : i32
    return %arg0, %arg1, %c0_i32 : i32, i32, i32
  }
  func.func @transform_2(%arg0: i32, %arg1: i32) -> (i32, i32, i32) {
    %c0_i32 = arith.constant 0 : i32
    %c0_i32_0 = arith.constant 0 : i32
    %c0_i32_1 = arith.constant 0 : i32
    return %arg0, %c0_i32, %c0_i32_0 : i32, i32, i32
  }
}

</mosaic_0001>

<bundles_post_ra>
// kernel: tpu_custom_call.1
= control target key start
LH: loop header
LB: loop body
LE: loop exit
PB: predicated region body
PF: predicated region fallthrough
CT: control target
= control target key end

     0   :  { %s1811_s0 = inlined_call_operand.vmem [shape: f32[2,64,32], index: 0, kind: input, shape index: {}]   ;;  %s1812_s1 = inlined_call_operand.vmem [shape: f32[2,64,32], index: 1, kind: input, shape index: {}]   ;;  %s1813_s2 = inlined_call_operand.hbm [shape: f32[2,8,128], index: 2, kind: output, shape index: {}]  }
   0x1   :  { %1816 = sst [smem:[#allocation10_spill]] %s1811_s0 }
   0x2   :  { %1817 = sst [smem:[#allocation11_spill]] %s1812_s1 }
   0x3   :  { %7 = vsyncpa [#allocation6], 0 }
   0x4   :  { %9 = vsyncpa [#allocation6 + $0x1], 0  ;;  %s1450_s9 = smov 0   ;;  %s1452_s10 = smov 0  }
   0x5   :  { %s1454_s11 = smov 0   ;;  %s1456_s12 = smov 0  }
   0x6   :  { %s1458_s13 = smov 0   ;;  %s1460_s14 = smov 0  }
   0x7 LB: > { %1818 = sst [smem:[#allocation8_spill]] %s1426_s13  ;;  %s1145_s15 = sadd.s32 4294967295, %s1430_s14   ;;  %s1430_s14 = sphi %s1460_s14, %s15_s14   ;;  %s1426_s13 = sphi %s1458_s13, %s1825_s13   ;;  %s1422_s12 = sphi %s1456_s12, %s1824_s12   ;;  %s1418_s11 = sphi %s1454_s11, %s1828_s11   ;;  %s1414_s10 = sphi %s1452_s10, %s1827_s10   ;;  %s1410_s9 = sphi %s1450_s9, %s1826_s9  }
   0x8   : > { %s1146_s16 = sadd.s32 4294967294, %s1430_s14   ;;  %s27_s17 = sadd.s32 1, %s1426_s13 }
   0x9   : > { %s90_s18 = sadd.s32 1, %s1418_s11  ;;  %p29_p0 = scmp.ge.s32.totalorder %s27_s17, 2 }
   0xa   : > { %p100_p1 = scmp.ne.s32.totalorder %s1418_s11, %s1414_s10  ;;  %p101_p2 = scmp.eq.s32.totalorder %s1145_s15, 1 }
   0xb   : > { %p106_p3 = scmp.ne.s32.totalorder %s1414_s10, %s1410_s9  ;;  %s1830_s17 = smov (%p29_p0, %s27_s17), 0 }
   0xc   : > { %1819 = sst [smem:[#allocation9_spill]] %s1830_s17  ;;  %p1490_p4 = por %p101_p2, %p100_p1 }
   0xd   : > { %p107_p5 = scmp.eq.s32.totalorder %s1146_s16, 1  ;;  %s87_s20 = ssub.s32 %s1426_s13, %s1830_s17 }
   0xe   : > { %p1149_p6 = scmp.ge.s32.totalorder %s1430_s14, 1  ;;  %p88_p7 = scmp.eq.s32.totalorder %s87_s20, 0 }
   0xf   : > { %p1497_p8 = por %p107_p5, %p106_p3  ;;  %p151_p9 = scmp.lt.s32.totalorder %s1430_s14, 3 }
  0x10   : > { %s1503_s22 = scalar_select %p88_p7, %s1418_s11, %s90_s18  }
  0x11   : > { %p152_p10 = pnand %p1149_p6, %p151_p9 }
  0x12   : > { %p187_p11 = scmp.lt.s32.totalorder (!%p152_p10), %s1422_s12, 1  ;;  %s1822_s1 = sld [smem:[#allocation11_spill]] (!%p152_p10) }
  0x13   : > { %155 = sbr.rel (%p152_p10) target bundleno = 810 (0x32a), region = 28  ;;  %s1823_s0 = sld [smem:[#allocation10_spill]] (!%p152_p10) }
  0x14   : > { %s183_s8 = sand.u32 (!%p152_p10), 1, %s1414_s10  }
  0x18   : > { %s188_s23 = scalar_select %p187_p11, %s1422_s12, 1  ;;  %vm230_vm0 = vcmask 261120   ;;  %vm623_vm1 = vcmask 253952   ;;  %vm392_vm2 = vcmask 523264   ;;  %vm1433_vm5 = vmmov 0  }
  0x1a   : > { %s1169_s24 = sshll.u32 %s188_s23, 6 }
  0x1b   : > { %s1510_s27 = scalar_lea.vmem %s1822_s1, %s1169_s24  ;;  %s1515_s30 = scalar_lea.vmem %s1823_s0, %s1169_s24 }
  0x1c   : > { %v1518_v0 = vld [vmem:[%s1510_s27] sm:$0xff]  ;;  %v1534_v6 = vld [vmem:[%s1510_s27 + $0x8] sm:$0xff]  ;;  %v1555_v20 = vld [vmem:[%s1510_s27 + $0x10] sm:$0xff] }
  0x1d   : > { %v1521_v1 = vld [vmem:[%s1515_s30] sm:$0xff]  ;;  %490 = vxpose.xlu1.b32.start [1/8] (short) (narrow) %v1518_v0, 32  ;;  %v252_v2 = vsel %vm230_vm0, %v1518_v0, 0.0  ;;  %v302_v3 = vmul.f32 %v1518_v0, %v1518_v0  ;;  %v1537_v7 = vld [vmem:[%s1515_s30 + $0x8] sm:$0xff]  ;;  %v253_v9 = vsel %vm230_vm0, %v1534_v6, 0.0  ;;  %v303_v10 = vmul.f32 %v1534_v6, %v1534_v6  ;;  %v1563_v25 = vld [vmem:[%s1510_s27 + $0x38] sm:$0xff] }
  0x1e   : > { %360 = vxpose.xlu0.b32.start [1/8] (short) (narrow) %v1521_v1, 32  ;;  %v222_v4 = vsub.f32 %v1521_v1, %v1518_v0  ;;  %v231_v5 = vsel %vm230_vm0, %v1521_v1, 0.0  ;;  %v273_v8 = vmul.f32 %v1521_v1, %v1521_v1  ;;  %v223_v11 = vsub.f32 %v1537_v7, %v1534_v6  ;;  %v1566_v26 = vld [vmem:[%s1515_s30 + $0x38] sm:$0xff]  ;;  %v1573_v31 = vld [vmem:[%s1515_s30 + $0x10] sm:$0xff]  ;;  %1227 = vmatprep.subr.mxu1 %v1563_v25  ;;  %v1614_v52 = vld [vmem:[%s1510_s27 + $0x28] sm:$0xff] }
  0x1f   : > { %v310_v12 = vsel %vm230_vm0, %v302_v3, 0.0  ;;  %v254_v14 = vadd.f32 %v253_v9, %v252_v2  ;;  %v232_v15 = vsel %vm230_vm0, %v1537_v7, 0.0  ;;  %v311_v17 = vsel %vm230_vm0, %v303_v10, 0.0  ;;  %1205 = vmatprep.subr.mxu0 %v1566_v26  ;;  %v1582_v36 = vld [vmem:[%s1510_s27 + $0x18] sm:$0xff]  ;;  %v1585_v37 = vld [vmem:[%s1510_s27 + $0x30] sm:$0xff]  ;;  %1228 = vmatpush3.msra.mxu1 %v1563_v25  ;;  %v1617_v53 = vld [vmem:[%s1515_s30 + $0x28] sm:$0xff] }
  0x20   : > { %v331_v13 = vmul.f32 %v222_v4, %v222_v4  ;;  %v281_v16 = vsel %vm230_vm0, %v273_v8, 0.0  ;;  %v274_v18 = vmul.f32 %v1537_v7, %v1537_v7  ;;  %v332_v19 = vmul.f32 %v223_v11, %v223_v11  ;;  %v1588_v38 = vld [vmem:[%s1515_s30 + $0x30] sm:$0xff]  ;;  %1206 = vmatpush3.msra.mxu0 %v1566_v26  ;;  %v1598_v43 = vld [vmem:[%s1515_s30 + $0x18] sm:$0xff]  ;;  %1229 = vmatprep.subr.mxu1 %v1585_v37  ;;  %v218_v62 = vld [vmem:[%s1510_s27 + $0x20] sm:$0xff] }
  0x21   : > { %491 = vxpose.xlu1.b32.cont [2/8] (short) (narrow) %v1534_v6, 32  ;;  %v312_v22 = vadd.f32 %v311_v17, %v310_v12  ;;  %v233_v23 = vadd.f32 %v232_v15, %v231_v5  ;;  %v255_v24 = vsel %vm230_vm0, %v1555_v20, 0.0  ;;  %v304_v29 = vmul.f32 %v1555_v20, %v1555_v20  ;;  %1207 = vmatprep.subr.mxu0 %v1588_v38  ;;  %v210_v63 = vld [vmem:[%s1515_s30 + $0x20] sm:$0xff] }
  0x22   : > { %v339_v21 = vsel %vm230_vm0, %v331_v13, 0.0  ;;  %361 = vxpose.xlu0.b32.cont [2/8] (short) (narrow) %v1537_v7, 32  ;;  %v282_v27 = vsel %vm230_vm0, %v274_v18, 0.0  ;;  %v340_v28 = vsel %vm230_vm0, %v332_v19, 0.0  ;;  %v256_v30 = vadd.f32 %v255_v24, %v254_v14  ;;  %1208 = vmatpush3.msra.mxu0 %v1588_v38 }
  0x23   : > { %v283_v32 = vadd.f32 %v282_v27, %v281_v16  ;;  %v341_v33 = vadd.f32 %v340_v28, %v339_v21  ;;  %v224_v34 = vsub.f32 %v1573_v31, %v1555_v20  ;;  %v234_v35 = vsel %vm230_vm0, %v1573_v31, 0.0  ;;  %1230 = vmatpush3.msra.mxu1 %v1585_v37  ;;  %1209 = vmatprep.subr.mxu0 %v1617_v53 }
  0x24   : > { %v313_v39 = vsel %vm230_vm0, %v304_v29, 0.0  ;;  %v275_v40 = vmul.f32 %v1573_v31, %v1573_v31  ;;  %v235_v41 = vadd.f32 %v234_v35, %v233_v23  ;;  %v257_v42 = vsel %vm230_vm0, %v1582_v36, 0.0  ;;  %1231 = vmatprep.subr.mxu1 %v1614_v52  ;;  %1210 = vmatpush3.msra.mxu0 %v1617_v53 }
  0x25   : > { %492 = vxpose.xlu1.b32.cont [3/8] (short) (narrow) %v1555_v20, 32  ;;  %v314_v44 = vadd.f32 %v313_v39, %v312_v22  ;;  %v333_v45 = vmul.f32 %v224_v34, %v224_v34  ;;  %v305_v46 = vmul.f32 %v1582_v36, %v1582_v36  ;;  %v236_v47 = vsel %vm230_vm0, %v1598_v43, 0.0  ;;  %1232 = vmatpush3.msra.mxu1 %v1614_v52 }
  0x26   : > { %362 = vxpose.xlu0.b32.cont [3/8] (short) (narrow) %v1573_v31, 32  ;;  %v284_v48 = vsel %vm230_vm0, %v275_v40, 0.0  ;;  %v258_v49 = vadd.f32 %v257_v42, %v256_v30  ;;  %v225_v50 = vsub.f32 %v1598_v43, %v1582_v36  ;;  %v276_v51 = vmul.f32 %v1598_v43, %v1598_v43  ;;  %1211 = vmatprep.subr.mxu0 %v210_v63 }
  0x27   : > { %v342_v54 = vsel %vm230_vm0, %v333_v45, 0.0  ;;  %v285_v55 = vadd.f32 %v284_v48, %v283_v32  ;;  %v315_v56 = vsel %vm230_vm0, %v305_v46, 0.0  ;;  %v237_v57 = vadd.f32 %v236_v47, %v235_v41  ;;  %1233 = vmatprep.subr.mxu1 %v218_v62  ;;  %1212 = vmatpush3.msra.mxu0 %v210_v63 }
  0x28   : > { %v343_v58 = vadd.f32 %v342_v54, %v341_v33  ;;  %v316_v59 = vadd.f32 %v315_v56, %v314_v44  ;;  %v286_v60 = vsel %vm230_vm0, %v276_v51, 0.0  ;;  %v334_v61 = vmul.f32 %v225_v50, %v225_v50  ;;  %1234 = vmatpush3.msra.mxu1 %v218_v62  ;;  %1213 = vmatprep.subr.mxu0 %v1598_v43 }
  0x29   : > { %493 = vxpose.xlu1.b32.cont [4/8] (short) (narrow) %v1582_v36, 32  ;;  %v287_v2 = vadd.f32 %v286_v60, %v285_v55  ;;  %v259_v3 = vsel %vm230_vm0, %v218_v62, 0.0  ;;  %v306_v4 = vmul.f32 %v218_v62, %v218_v62  ;;  %v226_v5 = vsub.f32 %v210_v63, %v218_v62  ;;  %1235 = vmatprep.subr.mxu1 %v1582_v36 }
  0x2a   : > { %363 = vxpose.xlu0.b32.cont [4/8] (short) (narrow) %v1598_v43, 32  ;;  %v344_v8 = vsel %vm230_vm0, %v334_v61, 0.0  ;;  %v260_v9 = vadd.f32 %v259_v3, %v258_v49  ;;  %v238_v10 = vsel %vm230_vm0, %v210_v63, 0.0  ;;  %v277_v11 = vmul.f32 %v210_v63, %v210_v63  ;;  %1214 = vmatpush3.msra.mxu0 %v1598_v43 }
  0x2b   : > { %v345_v12 = vadd.f32 %v344_v8, %v343_v58  ;;  %v317_v13 = vsel %vm230_vm0, %v306_v4, 0.0  ;;  %v335_v14 = vmul.f32 %v226_v5, %v226_v5  ;;  %v239_v15 = vadd.f32 %v238_v10, %v237_v57  ;;  %1236 = vmatpush3.msra.mxu1 %v1582_v36  ;;  %1215 = vmatprep.subr.mxu0 %v1573_v31 }
  0x2c   : > { %v318_v16 = vadd.f32 %v317_v13, %v316_v59  ;;  %v288_v17 = vsel %vm230_vm0, %v277_v11, 0.0  ;;  %v261_v18 = vsel %vm230_vm0, %v1614_v52, 0.0  ;;  %v307_v19 = vmul.f32 %v1614_v52, %v1614_v52  ;;  %1237 = vmatprep.subr.mxu1 %v1555_v20  ;;  %1216 = vmatpush3.msra.mxu0 %v1573_v31 }
  0x2d   : > { %494 = vxpose.xlu1.b32.cont [5/8] (short) (narrow) %v218_v62, 32  ;;  %v346_v21 = vsel %vm230_vm0, %v335_v14, 0.0  ;;  %v289_v22 = vadd.f32 %v288_v17, %v287_v2  ;;  %v262_v23 = vadd.f32 %v261_v18, %v260_v9  ;;  %v227_v24 = vsub.f32 %v1617_v53, %v1614_v52  ;;  %1238 = vmatpush3.msra.mxu1 %v1555_v20 }
  0x2e   : > { %364 = vxpose.xlu0.b32.cont [5/8] (short) (narrow) %v210_v63, 32  ;;  %v347_v27 = vadd.f32 %v346_v21, %v345_v12  ;;  %v319_v28 = vsel %vm230_vm0, %v307_v19, 0.0  ;;  %v240_v29 = vsel %vm230_vm0, %v1617_v53, 0.0  ;;  %v278_v30 = vmul.f32 %v1617_v53, %v1617_v53  ;;  %1217 = vmatprep.subr.mxu0 %v1537_v7 }
  0x2f   : > { %v320_v32 = vadd.f32 %v319_v28, %v318_v16  ;;  %v336_v33 = vmul.f32 %v227_v24, %v227_v24  ;;  %v241_v34 = vadd.f32 %v240_v29, %v239_v15  ;;  %v263_v35 = vsel %vm230_vm0, %v1585_v37, 0.0  ;;  %1239 = vmatprep.subr.mxu1 %v1534_v6  ;;  %1218 = vmatpush3.msra.mxu0 %v1537_v7 }
  0x30   : > { %v290_v39 = vsel %vm230_vm0, %v278_v30, 0.0  ;;  %v308_v40 = vmul.f32 %v1585_v37, %v1585_v37  ;;  %v264_v41 = vadd.f32 %v263_v35, %v262_v23  ;;  %v228_v42 = vsub.f32 %v1588_v38, %v1585_v37  ;;  %1240 = vmatpush3.msra.mxu1 %v1534_v6  ;;  %1219 = vmatprep.subr.mxu0 %v1521_v1 }
  0x31   : > { %495 = vxpose.xlu1.b32.cont [6/8] (short) (narrow) %v1614_v52, 32  ;;  %v348_v36 = vsel %vm230_vm0, %v336_v33, 0.0  ;;  %v291_v43 = vadd.f32 %v290_v39, %v289_v22  ;;  %v242_v44 = vsel %vm230_vm0, %v1588_v38, 0.0  ;;  %v279_v45 = vmul.f32 %v1588_v38, %v1588_v38  ;;  %1241 = vmatprep.subr.mxu1 %v1518_v0 }
  0x32   : > { %365 = vxpose.xlu0.b32.cont [6/8] (short) (narrow) %v1617_v53, 32  ;;  %v349_v46 = vadd.f32 %v348_v36, %v347_v27  ;;  %v321_v47 = vsel %vm230_vm0, %v308_v40, 0.0  ;;  %v337_v48 = vmul.f32 %v228_v42, %v228_v42  ;;  %v243_v31 = vadd.f32 %v242_v44, %v241_v34  ;;  %1220 = vmatpush3.msra.mxu0 %v1521_v1 }
  0x33   : > { %v322_v20 = vadd.f32 %v321_v47, %v320_v32  ;;  %v292_v49 = vsel %vm230_vm0, %v279_v45, 0.0  ;;  %v265_v50 = vsel %vm230_vm0, %v1563_v25, 0.0  ;;  %v309_v51 = vmul.f32 %v1563_v25, %v1563_v25  ;;  %1242 = vmatpush3.msra.mxu1 %v1518_v0 }
  0x34   : > { %v350_v52 = vsel %vm230_vm0, %v337_v48, 0.0  ;;  %v293_v53 = vadd.f32 %v292_v49, %v291_v43  ;;  %v266_v54 = vadd.f32 %v265_v50, %v264_v41  ;;  %v229_v55 = vsub.f32 %v1566_v26, %v1563_v25 }
  0x35   : > { %496 = vxpose.xlu1.b32.cont [7/8] (short) (narrow) %v1585_v37, 32  ;;  %v351_v56 = vadd.f32 %v350_v52, %v349_v46  ;;  %v323_v7 = vsel %vm230_vm0, %v309_v51, 0.0  ;;  %v244_v6 = vsel %vm230_vm0, %v1566_v26, 0.0  ;;  %v280_v57 = vmul.f32 %v1566_v26, %v1566_v26 }
  0x36   : > { %366 = vxpose.xlu0.b32.cont [7/8] (short) (narrow) %v1588_v38, 32  ;;  %v267_v58 = vrot.slane %v266_v54, 4  ;;  %v324_v59 = vadd.f32 %v323_v7, %v322_v20  ;;  %v338_v60 = vmul.f32 %v229_v55, %v229_v55  ;;  %v245_v61 = vadd.f32 %v244_v6, %v243_v31 }
  0x37   : > { %v294_v37 = vsel %vm230_vm0, %v280_v57, 0.0  ;;  %v1432_v50 = vmov 0.0  }
  0x38   : > { %v268_v38 = vadd.f32 %v267_v58, %v266_v54  ;;  %v325_v62 = vrot.slane %v324_v59, 4  ;;  %v352_v63 = vsel %vm230_vm0, %v338_v60, 0.0  ;;  %v246_v2 = vrot.slane %v245_v61, 4  ;;  %1249 = vmatprep.subr.mxu0 %v1432_v50  ;;  %1260 = vmatprep.subr.mxu1 %v1432_v50 }
  0x39   : > { %497 = vxpose.xlu1.b32.end [8/8] (short) (narrow) %v1563_v25, 32  ;;  %v295_v3 = vadd.f32 %v294_v37, %v293_v53  ;;  %v353_v4 = vadd.f32 %v352_v63, %v351_v56 }
  0x3a   : > { %367 = vxpose.xlu0.b32.end [8/8] (short) (narrow) %v1566_v26, 32  ;;  %v269_v5 = vrot.slane %v268_v38, 2  ;;  %v326_v8 = vadd.f32 %v325_v62, %v324_v59  ;;  %v247_v9 = vadd.f32 %v246_v2, %v245_v61 }
  0x3b   : > { %v296_v10 = vrot.slane %v295_v3, 4  ;;  %v354_v1 = vrot.slane %v353_v4, 4 }
  0x3c   : > { %v270_v11 = vadd.f32 %v269_v5, %v268_v38  ;;  %v327_v0 = vrot.slane %v326_v8, 2  ;;  %v248_v12 = vrot.slane %v247_v9, 2 }
  0x3d   : > { %v297_v13 = vadd.f32 %v296_v10, %v295_v3  ;;  %v355_v14 = vadd.f32 %v354_v1, %v353_v4 }
  0x3e   : > { %v271_v15 = vrot.slane %v270_v11, 1  ;;  %v328_v16 = vadd.f32 %v327_v0, %v326_v8  ;;  %v249_v17 = vadd.f32 %v248_v12, %v247_v9 }
  0x3f   : > { %v298_v18 = vrot.slane %v297_v13, 2  ;;  %v356_v19 = vrot.slane %v355_v14, 2 }
  0x40   : > { %v272_v25 = vadd.f32 %v271_v15, %v270_v11  ;;  %v329_v21 = vrot.slane %v328_v16, 1  ;;  %v250_v26 = vrot.slane %v249_v17, 1 }
  0x41   : > { %v299_v22 = vadd.f32 %v298_v18, %v297_v13  ;;  %v357_v23 = vadd.f32 %v356_v19, %v355_v14 }
  0x42   : > { %v330_v24 = vadd.f32 %v329_v21, %v328_v16  ;;  %625 = vst.msk [vmem:[#allocation2 + $0x1] sm:$0x1] %vm623_vm1, %v272_v25  ;;  %v251_v27 = vadd.f32 %v250_v26, %v249_v17 }
  0x43   : > { %v300_v28 = vrot.slane %v299_v22, 1  ;;  %v358_v29 = vrot.slane %v357_v23, 1 }
  0x44   : > { %627 = vst.msk [vmem:[#allocation2 + $0x3] sm:$0x1] %vm623_vm1, %v330_v24  ;;  %624 = vst.msk [vmem:[#allocation2] sm:$0x1] %vm623_vm1, %v251_v27 }
  0x45   : > { %v301_v30 = vadd.f32 %v300_v28, %v299_v22  ;;  %v359_v32 = vadd.f32 %v358_v29, %v357_v23 }
  0x47   : > { %626 = vst.msk [vmem:[#allocation2 + $0x2] sm:$0x1] %vm623_vm1, %v301_v30  ;;  %628 = vst.msk [vmem:[#allocation2 + $0x4] sm:$0x1] %vm623_vm1, %v359_v32 }
  0x49   : > { %v686_v16 = vld [vmem:[#allocation2 + $0x1] sm:$0x1] }
  0x4a   : > { %v687_v24 = vmul.f32 0.015625, %v686_v16 }
  0x4b   : > { %v684_v43 = vld [vmem:[#allocation2] sm:$0x1] }
  0x4c   : > { %v1712_v44 = vmul.f32 0.015625, %v684_v43 }
  0x4e   : > { %v689_v45 = vmul.f32 64.0, %v1712_v44  ;;  %v688_v47 = vld [vmem:[#allocation2 + $0x2] sm:$0x1]  ;;  %v916_v53 = vmul.f32 %v1712_v44, %v1712_v44 }
  0x50   : > { %v690_v46 = vmul.f32 %v689_v45, %v1712_v44  ;;  %v917_v56 = vsel %vm623_vm1, %v916_v53, 0.0 }
  0x52   : > { %v691_v48 = vsub.f32 %v688_v47, %v690_v46 }
  0x54   : > { %v1716_v31 = vmul.f32 0.015873017, %v691_v48 }
  0x56   : > { %v698_v20 = vadd.f32 1e-05, %v1716_v31 }
  0x58   : > { %1350 = vrsqrt.f32 %v698_v20  ;;  %vm701_vm3 = vcmp.eq.f32.partialorder %v698_v20, inf  ;;  %v704_v52 = vand.u32 2147483648, %v698_v20  ;;  %vm703_vm4 = vcmp.eq.f32.partialorder %v698_v20, 0.0 }
  0x65   : > { %v1351_v49 = vpop.eup %1350 }
  0x66   : > { %v700_v51 = vmul.f32 %v1351_v49, %v698_v20 }
  0x67   : > { %918 = vadd.xlane.f32.xlu0 %v917_v56  ;;  %v1015_v56 = vld [vmem:[#allocation2 + $0x4] sm:$0x1] }
  0x68   : > { %v702_v54 = vsel %vm701_vm3, %v698_v20, %v700_v51 }
  0x69   : > { %v705_v55 = vsel %vm703_vm4, %v704_v52, %v702_v54  ;;  %v990_v54 = vmul.f32 %v1716_v31, %v1716_v31 }
  0x6a   : > { %v714_v7 = vsub.f32 1.0, %v705_v55 }
  0x6b   : > { %v991_v55 = vsel %vm623_vm1, %v990_v54, 0.0 }
  0x6c   : > { %v715_v6 = vmax.f32 %v714_v7, 0.0  ;;  %v1016_v7 = vsel %vm623_vm1, %v1015_v56, 0.0 }
  0x6e   : > { %v717_v57 = vsel %vm623_vm1, %v715_v6, 0.0 }
  0x6f   : > { %718 = vadd.xlane.f32.xlu0 %v717_v57 }
  0x99   : > { %v506_v33 = vpop.trf.xlu1 }
  0x9a   : > { %v376_v34 = vpop.trf.xlu0  ;;  %1243 = vmatprep.mubr.msk.f32.mxu1 %vm392_vm2, %v506_v33 }
  0x9b   : > { %1221 = vmatprep.mubr.msk.f32.mxu0 %vm392_vm2, %v376_v34 }
  0x9d   : > { %v507_v35 = vpop.trf.xlu1 }
  0x9e   : > { %v377_v39 = vpop.trf.xlu0  ;;  %1244 = vmatmul.mubr.msk.f32.vlgmr.msra.gmra.mxu1 %vm392_vm2, %v507_v35 }
  0x9f   : > { %1222 = vmatmul.mubr.msk.f32.vlgmr.msra.gmra.mxu0 %vm392_vm2, %v377_v39  ;;  %v927_v39 = vmul.f32 %v687_v24, %v687_v24 }
  0xa1   : > { %v508_v40 = vpop.trf.xlu1 }
  0xa2   : > { %v378_v41 = vpop.trf.xlu0  ;;  %1246 = vmatprep.mubr.msk.f32.mxu1 %vm392_vm2, %v508_v40  ;;  %v694_v40 = vmul.f32 64.0, %v687_v24 }
  0xa3   : > { %1224 = vmatprep.mubr.msk.f32.mxu0 %vm392_vm2, %v378_v41  ;;  %v693_v41 = vld [vmem:[#allocation2 + $0x3] sm:$0x1] }
  0xa5   : > { %v509_v42 = vpop.trf.xlu1 }
  0xa6   : > { %v379_v36 = vpop.trf.xlu0  ;;  %1247 = vmatmul.mubr.msk.f32.gmra.mxu1 %vm392_vm2, %v509_v42  ;;  %v928_v42 = vsel %vm623_vm1, %v927_v39, 0.0 }
  0xa7   : > { %1225 = vmatmul.mubr.msk.f32.gmra.mxu0 %vm392_vm2, %v379_v36  ;;  %1268 = vmatprep.mubr.msk.f32.mxu1 %vm1433_vm5, %v1432_v50  ;;  %v695_v36 = vmul.f32 %v694_v40, %v687_v24 }
  0xa8   : > { %1257 = vmatprep.mubr.msk.f32.mxu0 %vm1433_vm5, %v1432_v50  ;;  %929 = vadd.xlane.f32.xlu1 %v928_v42 }
  0xa9   : > { %v696_v43 = vsub.f32 %v693_v41, %v695_v36 }
  0xab   : > { %v697_v45 = vmul.f32 0.015873017, %v696_v43 }
  0xad   : > { %v706_v46 = vadd.f32 1e-05, %v697_v45 }
  0xaf   : > { %1352 = vrsqrt.f32 %v706_v46  ;;  %vm709_vm6 = vcmp.eq.f32.partialorder %v706_v46, inf  ;;  %v712_v48 = vand.u32 2147483648, %v706_v46  ;;  %vm711_vm7 = vcmp.eq.f32.partialorder %v706_v46, 0.0 }
  0xbc   : > { %v1353_v47 = vpop.eup %1352 }
  0xbd   : > { %v708_v20 = vmul.f32 %v1353_v47, %v706_v46 }
  0xbf   : > { %v710_v49 = vsel %vm709_vm6, %v706_v46, %v708_v20 }
  0xf0   : > { %v919_v57 = vpop.xlane.xlu0 %918 }
 0x131   : > { %v930_v6 = vpop.xlane.xlu1 %929 }
 0x15e   : > { %v1245_v59 = vpop.f32.mrf.mxu1 }
 0x15f   : > { %v1223_v58 = vpop.f32.mrf.mxu0  ;;  %634 = vst.msk [vmem:[#allocation4 + $0x8] sm:$0xff] %vm230_vm0, %v1245_v59  ;;  %v719_v59 = vpop.xlane.xlu0 %718 }
 0x160   : > { %630 = vst.msk [vmem:[#allocation3 + $0x8] sm:$0xff] %vm230_vm0, %v1223_v58  ;;  %v600_v61 = vpop.f32.mrf.mxu1 }
 0x161   : > { %v471_v60 = vpop.f32.mrf.mxu0  ;;  %633 = vst.msk [vmem:[#allocation4] sm:$0xff] %vm230_vm0, %v600_v61 }
 0x162   : > { %629 = vst.msk [vmem:[#allocation3] sm:$0xff] %vm230_vm0, %v471_v60  ;;  %v720_v60 = vrot.slane %v719_v59, 4 }
 0x166   : > { %v1248_v38 = vpop.f32.mrf.mxu1  ;;  %v745_v62 = vld [vmem:[#allocation4 + $0x8] sm:$0xff] }
 0x167   : > { %v1226_v37 = vpop.f32.mrf.mxu0  ;;  %636 = vst.msk [vmem:[#allocation4 + $0x18] sm:$0xff] %vm230_vm0, %v1248_v38  ;;  %v965_v63 = vmul.f32 %v745_v62, %v745_v62  ;;  %v741_v10 = vld [vmem:[#allocation3 + $0x8] sm:$0xff] }
 0x168   : > { %632 = vst.msk [vmem:[#allocation3 + $0x18] sm:$0xff] %vm230_vm0, %v1226_v37  ;;  %v610_v3 = vpop.f32.mrf.mxu1  ;;  %v744_v5 = vld [vmem:[#allocation4] sm:$0xff]  ;;  %v939_v12 = vmul.f32 %v741_v10, %v741_v10 }
 0x169   : > { %v481_v2 = vpop.f32.mrf.mxu0  ;;  %v740_v4 = vld [vmem:[#allocation3] sm:$0xff]  ;;  %635 = vst.msk [vmem:[#allocation4 + $0x10] sm:$0xff] %vm230_vm0, %v610_v3  ;;  %v964_v8 = vmul.f32 %v744_v5, %v744_v5  ;;  %v969_v9 = vsel %vm230_vm0, %v965_v63, 0.0 }
 0x16a   : > { %631 = vst.msk [vmem:[#allocation3 + $0x10] sm:$0xff] %vm230_vm0, %v481_v2  ;;  %v938_v1 = vmul.f32 %v740_v4, %v740_v4  ;;  %v943_v22 = vsel %vm230_vm0, %v939_v12, 0.0  ;;  %v721_v2 = vadd.f32 %v720_v60, %v719_v59 }
 0x16b   : > { %v968_v11 = vsel %vm230_vm0, %v964_v8, 0.0 }
 0x16c   : > { %v970_v0 = vadd.f32 %v969_v9, %v968_v11  ;;  %v942_v15 = vsel %vm230_vm0, %v938_v1, 0.0  ;;  %v722_v9 = vrot.slane %v721_v2, 2  ;;  %v1003_v1 = vmul.f32 %v697_v45, %v697_v45 }
 0x16d   : > { %v944_v23 = vadd.f32 %v943_v22, %v942_v15 }
 0x16e   : > { %v747_v14 = vld [vmem:[#allocation4 + $0x18] sm:$0xff]  ;;  %v723_v11 = vadd.f32 %v722_v9, %v721_v2 }
 0x16f   : > { %v743_v13 = vld [vmem:[#allocation3 + $0x18] sm:$0xff]  ;;  %1261 = vmatpush3.msra.mxu1 %v747_v14  ;;  %v967_v17 = vmul.f32 %v747_v14, %v747_v14 }
 0x170   : > { %1250 = vmatpush3.msra.mxu0 %v743_v13  ;;  %1262 = vmatprep.subr.mxu1 %v1432_v50  ;;  %v746_v19 = vld [vmem:[#allocation4 + $0x10] sm:$0xff]  ;;  %v941_v26 = vmul.f32 %v743_v13, %v743_v13  ;;  %v724_v12 = vrot.slane %v723_v11, 1 }
 0x171   : > { %1251 = vmatprep.subr.mxu0 %v1432_v50  ;;  %v742_v18 = vld [vmem:[#allocation3 + $0x10] sm:$0xff]  ;;  %1263 = vmatpush3.msra.mxu1 %v746_v19  ;;  %v966_v21 = vmul.f32 %v746_v19, %v746_v19  ;;  %v973_v29 = vsel %vm230_vm0, %v967_v17, 0.0  ;;  %v931_v19 = vrot.slane %v930_v6, 4 }
 0x172   : > { %1252 = vmatpush3.msra.mxu0 %v742_v18  ;;  %v940_v25 = vmul.f32 %v742_v18, %v742_v18  ;;  %1264 = vmatprep.subr.mxu1 %v1432_v50  ;;  %v947_v33 = vsel %vm230_vm0, %v941_v26, 0.0  ;;  %v725_v14 = vadd.f32 %v724_v12, %v723_v11  ;;  %v920_v18 = vrot.slane %v919_v57, 4 }
 0x173   : > { %1253 = vmatprep.subr.mxu0 %v1432_v50  ;;  %1265 = vmatpush3.msra.mxu1 %v745_v62  ;;  %v971_v28 = vsel %vm230_vm0, %v966_v21, 0.0 }
 0x174   : > { %1254 = vmatpush3.msra.mxu0 %v741_v10  ;;  %v945_v27 = vsel %vm230_vm0, %v940_v25, 0.0  ;;  %1266 = vmatprep.subr.mxu1 %v1432_v50  ;;  %v972_v32 = vadd.f32 %v971_v28, %v970_v0  ;;  %1271 = vpush %v725_v14  ;;  %v921_v21 = vadd.f32 %v920_v18, %v919_v57 }
 0x175   : > { %1255 = vmatprep.subr.mxu0 %v1432_v50  ;;  %v946_v30 = vadd.f32 %v945_v27, %v944_v23  ;;  %1267 = vmatpush3.msra.mxu1 %v744_v5  ;;  %v713_v50 = vsel %vm711_vm7, %v712_v48, %v710_v49  ;;  %v932_v23 = vadd.f32 %v931_v19, %v930_v6 }
 0x176   : > { %1256 = vmatpush3.msra.mxu0 %v740_v4  ;;  %1269 = vmatmul.mubr.msk.f32.vlgmr.msra.gmra.mxu1 %vm230_vm0, %v687_v24  ;;  %v974_v35 = vadd.f32 %v973_v29, %v972_v32  ;;  %v727_v51 = vsub.f32 1.0, %v713_v50 }
 0x177   : > { %1258 = vmatmul.mubr.msk.f32.vlgmr.msra.gmra.mxu0 %vm230_vm0, %v1712_v44  ;;  %v948_v34 = vadd.f32 %v947_v33, %v946_v30  ;;  %v922_v30 = vrot.slane %v921_v21, 2 }
 0x178   : > { %v728_v52 = vmax.f32 %v727_v51, 0.0 }
 0x179   : > { %949 = vadd.xlane.f32.xlu0 %v948_v34  ;;  %v923_v47 = vadd.f32 %v922_v30, %v921_v21 }
 0x17a   : > { %v729_v53 = vsel %vm623_vm1, %v728_v52, 0.0 }
 0x17b   : > { %730 = vadd.xlane.f32.xlu1 %v729_v53 }
 0x17d   : > { %992 = vadd.xlane.f32.xlu0 %v991_v55 }
 0x181   : > { %1017 = vadd.xlane.f32.xlu0 %v1016_v7  ;;  %v924_v7 = vrot.slane %v923_v47, 1 }
 0x183   : > { %v925_v2 = vadd.f32 %v924_v7, %v923_v47 }
 0x1a5   : > { %s1762_s3 = spop %1271 }
 0x202   : > { %v950_v16 = vpop.xlane.xlu0 %949 }
 0x203   : > { %v951_v25 = vrot.slane %v950_v16, 4 }
 0x204   : > { %v731_v58 = vpop.xlane.xlu1 %730 }
 0x205   : > { %v732_v61 = vrot.slane %v731_v58, 4  ;;  %v952_v28 = vadd.f32 %v951_v25, %v950_v16 }
 0x206   : > { %v993_v17 = vpop.xlane.xlu0 %992 }
 0x207   : > { %v733_v4 = vadd.f32 %v732_v61, %v731_v58  ;;  %v994_v22 = vrot.slane %v993_v17, 4  ;;  %v953_v41 = vrot.slane %v952_v28, 2 }
 0x209   : > { %v734_v10 = vrot.slane %v733_v4, 2  ;;  %v995_v33 = vadd.f32 %v994_v22, %v993_v17  ;;  %v954_v51 = vadd.f32 %v953_v41, %v952_v28 }
 0x20a   : > { %v1018_v27 = vpop.xlane.xlu0 %1017 }
 0x20b   : > { %v735_v0 = vadd.f32 %v734_v10, %v733_v4  ;;  %v1019_v34 = vrot.slane %v1018_v27, 4  ;;  %v996_v43 = vrot.slane %v995_v33, 2  ;;  %v955_v61 = vrot.slane %v954_v51, 1 }
 0x20d   : > { %v736_v13 = vrot.slane %v735_v0, 1  ;;  %v1020_v46 = vadd.f32 %v1019_v34, %v1018_v27  ;;  %v997_v6 = vadd.f32 %v996_v43, %v995_v33 }
 0x20f   : > { %v737_v15 = vadd.f32 %v736_v13, %v735_v0  ;;  %v1021_v55 = vrot.slane %v1020_v46, 2 }
 0x211   : > { %1273 = vpush %v737_v15 }
 0x236   : > { %v890_v38 = vpop.f32.mrf.mxu1 }
 0x237   : > { %v817_v37 = vpop.f32.mrf.mxu0  ;;  %v905_v63 = vmul.f32 %v890_v38, %v687_v24 }
 0x238   : > { %v894_v62 = vmul.f32 %v817_v37, %v1712_v44  ;;  %v1270_v3 = vpop.f32.mrf.mxu1  ;;  %v1004_v44 = vsel %vm623_vm1, %v1003_v1, 0.0 }
 0x239   : > { %v1259_v31 = vpop.f32.mrf.mxu0  ;;  %v906_v8 = vsel %vm623_vm1, %v905_v63, 0.0  ;;  %v1022_v63 = vadd.f32 %v1021_v55, %v1020_v46 }
 0x23a   : > { %v895_v5 = vsel %vm623_vm1, %v894_v62, 0.0  ;;  %v998_v31 = vrot.slane %v997_v6, 1 }
 0x23b   : > { %896 = vadd.xlane.f32.xlu1 %v895_v5  ;;  %v1023_v11 = vrot.slane %v1022_v63, 1 }
 0x23c   : > { %v999_v1 = vadd.f32 %v998_v31, %v997_v6 }
 0x23d   : > { %v1024_v13 = vadd.f32 %v1023_v11, %v1022_v63 }
 0x23f   : > { %907 = vadd.xlane.f32.xlu1 %v906_v8  ;;  %v956_v8 = vadd.f32 %v955_v61, %v954_v51 }
 0x242   : > { %s1764_s4 = spop %1273 }
 0x243   : > { %975 = vadd.xlane.f32.xlu1 %v974_v35  ;;  %v933_v35 = vrot.slane %v932_v23, 2  ;;  %s739_s6 = sadd.f32 %s1764_s4, %s1762_s3 }
 0x245   : > { %v934_v50 = vadd.f32 %v933_v35, %v932_v23  ;;  %v1032_v16 = vstv %s739_s6 }
 0x247   : > { %1005 = vadd.xlane.f32.xlu1 %v1004_v44  ;;  %v935_v60 = vrot.slane %v934_v50, 1  ;;  %v1026_v44 = vlaneseq }
 0x249   : > { %v936_v4 = vadd.f32 %v935_v60, %v934_v50  ;;  %v1027_v14 = vand.u32 127, %v1026_v44 }
 0x24b   : > { %vm1028_vm8 = vcmp.eq.s32.totalorder %v1027_v14, 0  ;;  %vm1031_vm9 = vcmp.eq.s32.totalorder %v1027_v14, 1  ;;  %vm1035_vm10 = vcmp.eq.s32.totalorder %v1027_v14, 2 }
 0x24c   : > { %v1033_v18 = vsel %vm1031_vm9, %v1032_v16, 0.0 }
 0x2c4   : > { %v897_v26 = vpop.xlane.xlu1 %896 }
 0x2c5   : > { %v898_v24 = vrot.slane %v897_v26, 4 }
 0x2c7   : > { %v899_v29 = vadd.f32 %v898_v24, %v897_v26 }
 0x2c8   : > { %v908_v32 = vpop.xlane.xlu1 %907 }
 0x2c9   : > { %v900_v39 = vrot.slane %v899_v29, 2  ;;  %v909_v40 = vrot.slane %v908_v32, 4 }
 0x2cb   : > { %v910_v42 = vadd.f32 %v909_v40, %v908_v32  ;;  %v901_v36 = vadd.f32 %v900_v39, %v899_v29 }
 0x2cc   : > { %v976_v45 = vpop.xlane.xlu1 %975 }
 0x2cd   : > { %v911_v48 = vrot.slane %v910_v42, 2  ;;  %v977_v20 = vrot.slane %v976_v45, 4  ;;  %v902_v49 = vrot.slane %v901_v36, 1 }
 0x2cf   : > { %v978_v52 = vadd.f32 %v977_v20, %v976_v45  ;;  %v903_v53 = vadd.f32 %v902_v49, %v901_v36  ;;  %v912_v54 = vadd.f32 %v911_v48, %v910_v42 }
 0x2d0   : > { %v1006_v56 = vpop.xlane.xlu1 %1005 }
 0x2d1   : > { %v979_v57 = vrot.slane %v978_v52, 2  ;;  %v1007_v58 = vrot.slane %v1006_v56, 4  ;;  %1275 = vpush %v903_v53  ;;  %v913_v59 = vrot.slane %v912_v54, 1 }
 0x2d3   : > { %v1008_v37 = vadd.f32 %v1007_v58, %v1006_v56  ;;  %v914_v38 = vadd.f32 %v913_v59, %v912_v54  ;;  %v980_v62 = vadd.f32 %v979_v57, %v978_v52 }
 0x2d5   : > { %v1009_v3 = vrot.slane %v1008_v37, 2  ;;  %1277 = vpush %v914_v38  ;;  %v981_v5 = vrot.slane %v980_v62, 1 }
 0x2d6   : > { %1279 = vpush %v925_v2 }
 0x2d7   : > { %v1010_v9 = vadd.f32 %v1009_v3, %v1008_v37  ;;  %1281 = vpush %v936_v4  ;;  %v982_v10 = vadd.f32 %v981_v5, %v980_v62 }
 0x2d8   : > { %1283 = vpush %v956_v8 }
 0x2d9   : > { %1285 = vpush %v982_v10  ;;  %v1011_v0 = vrot.slane %v1010_v9, 1 }
 0x2da   : > { %1287 = vpush %v999_v1 }
 0x2db   : > { %v1012_v12 = vadd.f32 %v1011_v0, %v1010_v9 }
 0x2dd   : > { %1289 = vpush %v1012_v12 }
 0x2de   : > { %1291 = vpush %v1024_v13 }
 0x302   : > { %s1276_s5 = spop %1275 }
 0x303   : > { %s958_s15 = smul.f32 128.0, %s1276_s5 }
 0x306   : > { %s1278_s7 = spop %1277 }
 0x307   : > { %s1280_s16 = spop %1279  ;;  %s984_s27 = smul.f32 128.0, %s1278_s7 }
 0x308   : > { %s960_s18 = smul.f32 64.0, %s1280_s16  ;;  %s1282_s20 = spop %1281 }
 0x309   : > { %s986_s23 = smul.f32 64.0, %s1282_s20  ;;  %s1284_s24 = spop %1283 }
 0x30a   : > { %s961_s25 = smul.f32 %s960_s18, %s960_s18  ;;  %s959_s26 = ssub.f32 %s1284_s24, %s958_s15 }
 0x30b   : > { %s1286_s28 = spop %1285  ;;  %s987_s29 = smul.f32 %s986_s23, %s986_s23 }
 0x30c   : > { %s962_s30 = sadd.f32 %s961_s25, %s959_s26  ;;  %s1288_s1 = spop %1287 }
 0x30d   : > { %s985_s0 = ssub.f32 %s1286_s28, %s984_s27  ;;  %s1150_s20 = sshll.u32 %s183_s8, 3 }
 0x30e   : > { %s963_s17 = smul.f32 0.00025195265, %s962_s30  ;;  %s1290_s3 = spop %1289 }
 0x30f   : > { %s988_s4 = sadd.f32 %s987_s29, %s985_s0  ;;  %s1292_s5 = spop %1291 }
 0x310   : > { %s1001_s16 = ssub.f32 %s963_s17, %s1288_s1  ;;  %v1029_v15 = vstv %s1292_s5  ;;  %s1166_s18 = sshll.u32 %s1422_s12, 7 }
 0x311   : > { %s989_s13 = smul.f32 0.00025195265, %s988_s4  ;;  %v1030_v17 = vsel %vm1028_vm8, %v1029_v15, 0.0  ;;  %s185_s23 = scalar_lea.vmem [#allocation5], %s1150_s20 }
 0x312   : > { %s1054_s24 = sshll.u32 %s185_s23, 4  ;;  %v1034_v25 = vadd.f32 %v1033_v18, %v1030_v17  ;;  %s1052_s17 = scalar_lea.hbm %s1813_s2, %s1166_s18  ;;  %s1055_s24 = int_to_ptr.vmem [resolvable:$true] %s1054_s24 }
 0x313   : > { %s1002_s7 = sadd.f32 %s1001_s16, %s989_s13  ;;  %s1041_s13 = scalar_lea.sflag [#allocation6], %s183_s8 }
 0x314   : > { %s1354_s6 = scalar_lea.vmem %s1055_s24, 128  ;;  %s1434_s12 = smov [#allocation5]  }
 0x315   : > { %s1014_s15 = ssub.f32 %s1002_s7, %s1290_s3  ;;  %p1355_p12 = scmp.ne.s32.totalorder %s1055_s24, %s1354_s6 }
 0x316   : > { %s1358_s25 = sshll.u32 %s1434_s12, 4  ;;  %s1359_s25 = int_to_ptr.vmem [resolvable:$false] %s1358_s25 }
 0x317   : > { %v1036_v19 = vstv %s1014_s15  ;;  %p1356_p13 = pnand %p1355_p12, %p1490_p4  ;;  %s1360_s26 = scalar_lea.vmem %s1359_s25, 256 }
 0x318   : > { %v1037_v21 = vsel %vm1035_vm10, %v1036_v19, 0.0  ;;  %p1361_p1 = scmp.lt.s32.totalorder %s1055_s24, %s1359_s25  ;;  %p1362_p2 = scmp.lt.s32.totalorder %s1360_s26, %s1354_s6 }
 0x319   : > { %v1038_v26 = vadd.f32 %v1037_v21, %v1034_v25  ;;  %p1357_p0 = pneg %p1356_p13 }
 0x31a   : > { %p1363_p3 = por %p1362_p2, %p1361_p1 }
 0x31b   : > { %1039 = vst [vmem:[%s185_s23] sm:$0xff] %v1038_v26 }
 0x31c   : > { %p1364_p5 = pnand %p1363_p3, %p1357_p0 }
 0x31e   : > { %1367 = shalt.err (!%p1364_p5)
}
 0x31f   : > { %s1368_s27 = scalar_lea.hbm %s1052_s17, 128  ;;  %s1372_s29 = scalar_lea.hbm %s1813_s2, 256 }
 0x320   : > { %p1369_p6 = scmp.ne.s32.totalorder %s1052_s17, %s1368_s27  ;;  %p1373_p10 = scmp.lt.s32.totalorder %s1052_s17, %s1813_s2 }
 0x321   : > { %p1374_p11 = scmp.lt.s32.totalorder %s1372_s29, %s1368_s27 }
 0x322   : > { %p1370_p7 = pnand %p1369_p6, %p1490_p4 }
 0x323   : > { %p1375_p12 = por %p1374_p11, %p1373_p10 }
 0x324   : > { %p1371_p9 = pneg %p1370_p7 }
 0x326   : > { %p1376_p13 = pnand %p1375_p12, %p1371_p9 }
 0x328   : > { %1379 = shalt.err (!%p1376_p13)
}
 0x329   : > { %1293 = dma.vmem_to_hbm [thread:$0]  (%p1490_p4), %s1055_s24, 128, %s1052_s17, %s1041_s13  }
 0x32a PF: > { %p1299_p0 = scmp.ge.s32.totalorder %s1430_s14, 2  ;;  %s1066_s4 = sand.u32 1, %s1410_s9  }
 0x32b   : > { %s1067_s5 = scalar_lea.sflag [#allocation6], %s1066_s4 }
 0x32c   : > { %p1296_p1 = pnand %p1299_p0, %p1497_p8 }
 0x32e   : > { %p1297_p2 = pneg %p1296_p1 }
 0x330   : > { %1405 = dma.done.wait (%p1297_p2), %s1067_s5, 128  }
 0x331   : > { %1407 = vsyncadd (%p1297_p2), %s1067_s5, 4294967168  ;;  %s15_s14 = sadd.s32 1, %s1430_s14   ;;  %s1824_s12 = sld [smem:[#allocation8_spill]] }
 0x332   : > { %p12_p3 = scmp.ge.s32.totalorder %s15_s14, 4   ;;  %s1825_s13 = sld [smem:[#allocation9_spill]] }
 0x333   : > { %s1826_s9 = smov %s1414_s10  ;;  %s1827_s10 = smov %s1418_s11 }
 0x334   : > { %s1828_s11 = smov %s1503_s22  ;;  %14 = sbr.rel (!%p12_p3) target bundleno = 7 (0x7), region = 78 }
 0x339   :  { %1072 = vsyncpa [#allocation6], 1 }
 0x33a   :  { %1074 = vsyncpa [#allocation6 + $0x1], 1 }

</bundles_post_ra>
